<compile_context>
chip_gen: v7x
topology: tpu7x:2x2x1
jax: 0.10.0
libtpu: 0.0.40
codegen_flags: <defaults>
</compile_context>

<pallas_src>
import functools

import jax
import jax.numpy as jnp
from jax.experimental import pallas as pl
from jax.experimental.pallas import tpu as pltpu


# --------------------------------------------------------------------------------------
# Small helpers
# --------------------------------------------------------------------------------------
def _cdiv(a, b):
    return -(-a // b)


def _round_up(x, m):
    return _cdiv(x, m) * m


def _vmem_budget_bytes():
    """~75% of physical VMEM (48 MiB fallback).  Used both as the scoped
    vmem_limit_bytes and as the budget the batch tile is sized against."""
    cap = 64 * 1024 * 1024
    try:
        cap = int(pltpu.get_tpu_info().vmem_capacity_bytes)
    except Exception:
        pass
    return max(32 * 1024 * 1024, (cap * 3) // 4)


def _weight_spec(shape):
    """Full-array block with a constant index map (weights stay resident across the
    batch grid).  Single-buffered when the running JAX supports pipeline_mode."""
    zero_map = lambda b: (0,) * len(shape)
    if hasattr(pl, "Buffered"):
        try:
            return pl.BlockSpec(shape, zero_map, pipeline_mode=pl.Buffered(1))
        except Exception:
            pass
    return pl.BlockSpec(shape, zero_map)


def _pick_batch_block(B, per_item_bytes, resident_bytes, vmem_budget, requested):
    """Batch tile: biggest that fits the VMEM budget, capped so the grid has >= 4
    steps when the batch allows it, rounded to a multiple of 8 (sublane-aligned
    output rows).  Returns (bt, B_pad) with B_pad a multiple of bt."""
    if requested is not None:
        bt = max(1, min(B, int(requested)))
    else:
        budget = max(vmem_budget * 4 // 5 - resident_bytes, per_item_bytes)
        bt = max(1, budget // max(per_item_bytes, 1))
        bt = min(bt, max(1, _cdiv(B, 4)))        # keep >= 4 grid steps when possible
    if B >= 8:
        bt = max(8, (min(bt, B) // 8) * 8)
    else:
        bt = B                                    # tiny batch: one full-extent block
    return bt, _round_up(B, bt)


# --------------------------------------------------------------------------------------
# Fused additive-pooling kernel (all heads at once, lane-dense N = H*head_dim)
# --------------------------------------------------------------------------------------
def _fused_additive_kernel(tok_ref, logmask_ref, pw_ref, pb_ref,
                           w1_ref, w1b_ref, w2_ref, w2b_ref, out_ref,
                           *, approx_recip):
    # tok_ref     : (Bt, S, D)   compute dtype (bf16 default)
    # logmask_ref : (Bt, S, 1)   f32 additive mask (0 or -1e30); S on sublanes
    # pw_ref      : (D,  N)      N = H*head_dim
    # pb_ref      : (1,  N)      f32
    # w1_ref      : (N,  M)      M = H*hidden_dim (block-diagonal)
    # w1b_ref     : (1,  M)      f32
    # w2_ref      : (M,  N)      (block-diagonal)
    # w2b_ref     : (1,  N)      f32
    # out_ref     : (Bt, N)      f32
    Bt, S, D = tok_ref.shape
    N = pw_ref.shape[1]

    tok = tok_ref[...].reshape(Bt * S, D)          # layout no-op (S % 16 == 0)

    # H_all = X @ P_all + b_P   (all heads concatenated along lanes)
    h_all = jnp.dot(tok, pw_ref[...], preferred_element_type=jnp.float32)
    h_all = h_all + pb_ref[...]                    # (Bt*S, N) f32

    # A = relu(H_all @ W1_bd + b1) @ W2_bd + b2    (block-diag == per-head MLPs)
    a = jnp.dot(h_all.astype(w1_ref.dtype), w1_ref[...],
                preferred_element_type=jnp.float32) + w1b_ref[...]
    a = jnp.maximum(a, 0.0)
    a = jnp.dot(a.astype(w2_ref.dtype), w2_ref[...],
                preferred_element_type=jnp.float32) + w2b_ref[...]     # (Bt*S, N)

    # Masked softmax over the sequence axis (independent per channel -> exact),
    # then v = sum_seq(H_all * softmax(A)).  Divide folded after the reduction.
    logits = a.reshape(Bt, S, N) + logmask_ref[...]                    # lane broadcast
    h3 = h_all.reshape(Bt, S, N)

    m = jnp.max(logits, axis=1, keepdims=True)
    e = jnp.exp(logits - m)
    denom = jnp.sum(e, axis=1)                                         # (Bt, N)
    num = jnp.sum(h3 * e, axis=1)                                      # (Bt, N)

    inv = pl.reciprocal(denom, approx=True) if approx_recip else 1.0 / denom
    out_ref[...] = (num * inv).astype(out_ref.dtype)


# --------------------------------------------------------------------------------------
# One-time weight fusion (module init, NOT per forward call)
# --------------------------------------------------------------------------------------
def fuse_additive_weights(p_w, p_b, w1_w, w1_b, w2_w, w2_b,
                          compute_dtype=jnp.bfloat16):
    """Pack per-head weights once.

    p_w (H, D, hd), p_b (H, hd), w1_w (H, hd, hid), w1_b (H, hid),
    w2_w (H, hid, hd), w2_b (H, hd)  ->
      p_f (D, N), pb_f (1, N), w1_f (N, M) block-diag, w1b_f (1, M),
      w2_f (M, N) block-diag, w2b_f (1, N)   with N = H*hd, M = H*hid.
    """
    H, D, hd = p_w.shape
    hid = w1_w.shape[2]
    N, M = H * hd, H * hid
    p_f = jnp.transpose(p_w, (1, 0, 2)).reshape(D, N).astype(compute_dtype)
    w1_f = jax.scipy.linalg.block_diag(*[w1_w[h] for h in range(H)]).astype(compute_dtype)
    w2_f = jax.scipy.linalg.block_diag(*[w2_w[h] for h in range(H)]).astype(compute_dtype)
    pb_f = p_b.reshape(1, N).astype(jnp.float32)
    w1b_f = w1_b.reshape(1, M).astype(jnp.float32)
    w2b_f = w2_b.reshape(1, N).astype(jnp.float32)
    return p_f, pb_f, w1_f, w1b_f, w2_f, w2b_f


# --------------------------------------------------------------------------------------
# Additive pooling forward (pallas_call wrapper)
# --------------------------------------------------------------------------------------
@functools.partial(jax.jit, static_argnames=("batch_block",))
def multihead_generalized_pooling_additive(tokens, mask,
                                           p_f, pb_f, w1_f, w1b_f, w2_f, w2b_f,
                                           *, batch_block=None):
    """forward_additive: tokens (B,S,D) f32, mask (B,S) {0,1} f32, fused weights from
    fuse_additive_weights().  Returns the (B, H*hd) f32 sentence embedding."""
    B, S, D = tokens.shape
    N = p_f.shape[1]
    M = w1_f.shape[1]
    compute_dtype = p_f.dtype
    is_bf16 = jnp.dtype(compute_dtype) == jnp.dtype(jnp.bfloat16)
    tok_isz = jnp.dtype(compute_dtype).itemsize

    # ---- tile sizing against an explicit VMEM budget --------------------------------
    S_pad = _round_up(S, 16)                       # sublane-aligned -> reshapes free
    vmem_budget = _vmem_budget_bytes()
    resident = (D * N + N * M + M * N) * tok_isz + (2 * N + M) * 4     # weights, 1 buf
    per_item = (S_pad * (2 * D * tok_isz          # tokens, double-buffered
                         + 2 * 4                  # log-mask, double-buffered
                         + (3 * N + M) * 4)       # h_all / a / logits-e intermediates
                + 2 * N * 4)                      # output block
    bt, B_pad = _pick_batch_block(B, per_item, resident, vmem_budget, batch_block)

    # ---- pad batch/sequence; hoist log(mask) out of the kernel -----------------------
    tok_in = tokens.astype(compute_dtype)
    mask_f = mask.astype(jnp.float32)
    logmask = jnp.where(mask_f > 0,
                        jnp.log(jnp.where(mask_f > 0, mask_f, 1.0)),
                        jnp.float32(-1e30))[:, :, None]                # (B, S, 1)
    if (B_pad, S_pad) != (B, S):
        tok_in = jnp.pad(tok_in, ((0, B_pad - B), (0, S_pad - S), (0, 0)))
        logmask = jnp.pad(logmask, ((0, B_pad - B), (0, S_pad - S), (0, 0)),
                          constant_values=-1e30)

    # ---- advisory cost estimate -------------------------------------------------------
    flops = 2 * B_pad * S_pad * (D * N + N * M + M * N)
    transcendentals = B_pad * S_pad * N + B_pad * N
    bytes_accessed = (tok_in.size * tok_isz + logmask.size * 4
                      + (p_f.size + w1_f.size + w2_f.size) * tok_isz
                      + (pb_f.size + w1b_f.size + w2b_f.size) * 4
                      + B_pad * N * 4)

    kernel = functools.partial(_fused_additive_kernel, approx_recip=is_bf16)

    out = pl.pallas_call(
        kernel,
        out_shape=jax.ShapeDtypeStruct((B_pad, N), jnp.float32),
        grid_spec=pltpu.PrefetchScalarGridSpec(
            num_scalar_prefetch=0,
            grid=(B_pad // bt,),
            in_specs=[
                pl.BlockSpec((bt, S_pad, D), lambda b: (b, 0, 0)),   # tokens
                pl.BlockSpec((bt, S_pad, 1), lambda b: (b, 0, 0)),   # log-mask (S on sublanes)
                _weight_spec((D, N)),                                # fused P (resident)
                _weight_spec((1, N)),                                # P bias
                _weight_spec((N, M)),                                # block-diag W1
                _weight_spec((1, M)),                                # W1 bias
                _weight_spec((M, N)),                                # block-diag W2
                _weight_spec((1, N)),                                # W2 bias
            ],
            out_specs=pl.BlockSpec((bt, N), lambda b: (b, 0)),       # lane-dense (B, H*hd)
        ),
        compiler_params=pltpu.CompilerParams(
            dimension_semantics=("parallel",),
            vmem_limit_bytes=vmem_budget),
        cost_estimate=pl.CostEstimate(flops=flops,
                                      transcendentals=transcendentals,
                                      bytes_accessed=bytes_accessed),
    )(tok_in, logmask, p_f, pb_f, w1_f, w1b_f, w2_f, w2b_f)
    return out[:B]


# --------------------------------------------------------------------------------------
# MEAN / MAX pooling paths (pure seq reductions; mask ignored, as in the PyTorch module)
# --------------------------------------------------------------------------------------
def _seq_reduce_kernel(tok_ref, out_ref, *, op):
    if op == "mean":
        # accumulate in f32 even for bf16 tokens
        out_ref[...] = jnp.mean(tok_ref[...].astype(jnp.float32),
                                axis=1).astype(out_ref.dtype)
    else:  # "max"
        out_ref[...] = jnp.max(tok_ref[...], axis=1).astype(out_ref.dtype)


@functools.partial(jax.jit, static_argnames=("op", "batch_block"))
def multihead_generalized_pooling_reduce(tokens, *, op="mean", batch_block=None):
    """MEAN_POOLING / MAX_POOLING: reduction over the sequence axis (HBM-BW bound)."""
    assert op in ("mean", "max")
    B, S, D = tokens.shape
    isz = jnp.dtype(tokens.dtype).itemsize
    vmem_budget = _vmem_budget_bytes()
    per_item = S * D * (2 * isz + 4) + 2 * D * isz
    bt, B_pad = _pick_batch_block(B, per_item, 0, vmem_budget, batch_block)
    tok_in = tokens
    if B_pad != B:
        # edge padding keeps padded-block max/mean finite; padded rows are discarded
        tok_in = jnp.pad(tokens, ((0, B_pad - B), (0, 0), (0, 0)), mode="edge")
    out = pl.pallas_call(
        functools.partial(_seq_reduce_kernel, op=op),
        out_shape=jax.ShapeDtypeStruct((B_pad, D), tokens.dtype),
        grid_spec=pltpu.PrefetchScalarGridSpec(
            num_scalar_prefetch=0,
            grid=(B_pad // bt,),
            in_specs=[pl.BlockSpec((bt, S, D), lambda b: (b, 0, 0))],
            out_specs=pl.BlockSpec((bt, D), lambda b: (b, 0)),
        ),
        compiler_params=pltpu.CompilerParams(
            dimension_semantics=("parallel",),
            vmem_limit_bytes=vmem_budget),
    )(tok_in)
    return out[:B]


# --------------------------------------------------------------------------------------
# Pure-JAX reference (mirrors the torch forward_additive head loop)
# --------------------------------------------------------------------------------------
def _reference_additive(tokens, mask, p_w, p_b, w1_w, w1_b, w2_w, w2_b):
    logmask = jnp.log(mask)[:, :, None]
    outs = []
    for h in range(p_w.shape[0]):
        h_i = tokens @ p_w[h] + p_b[h]
        a = jax.nn.relu(h_i @ w1_w[h] + w1_b[h]) @ w2_w[h] + w2_b[h]
        a = jax.nn.softmax(a + logmask, axis=1)
        outs.append(jnp.sum(h_i * a, axis=1))
    return jnp.concatenate(outs, axis=-1)


if __name__ == "__main__":
    # Small shapes consistent with the module (token_dim == sentence_dim,
    # head_dim = sentence_dim / num_heads, hidden_dim = 4 * head_dim).
    # Odd B / non-multiple-of-16 S exercise the batch/sequence padding paths.
    B, S = 10, 12
    token_dim = sentence_dim = 64
    num_heads = 8
    head_dim = sentence_dim // num_heads        # 8
    hidden_dim = 4 * head_dim                   # 32

    key = jax.random.PRNGKey(0)
    keys = jax.random.split(key, 8)

    tokens = jax.random.normal(keys[0], (B, S, token_dim), dtype=jnp.float32)
    mask = jnp.ones((B, S), dtype=jnp.float32)
    mask = mask.at[1, 9:].set(0.0).at[7, 5:].set(0.0)   # some padded positions

    # Deterministic "RANDOM"-style init (kaiming-like scale, small biases).
    p_w = 0.1 * jax.random.normal(keys[1], (num_heads, token_dim, head_dim), jnp.float32)
    p_b = 0.01 * jax.random.normal(keys[2], (num_heads, head_dim), jnp.float32)
    w1_w = 0.1 * jax.random.normal(keys[3], (num_heads, head_dim, hidden_dim), jnp.float32)
    w1_b = 0.01 * jax.random.normal(keys[4], (num_heads, hidden_dim), jnp.float32)
    w2_w = 0.1 * jax.random.normal(keys[5], (num_heads, hidden_dim, head_dim), jnp.float32)
    w2_b = 0.01 * jax.random.normal(keys[6], (num_heads, head_dim), jnp.float32)

    ref = _reference_additive(tokens, mask, p_w, p_b, w1_w, w1_b, w2_w, w2_b)

    # --- f32 run (strict correctness check) ------------------------------------------
    fused_f32 = fuse_additive_weights(p_w, p_b, w1_w, w1_b, w2_w, w2_b,
                                      compute_dtype=jnp.float32)
    out_f32 = jax.block_until_ready(
        multihead_generalized_pooling_additive(tokens, mask, *fused_f32))
    assert out_f32.shape == (B, sentence_dim)
    assert jnp.allclose(out_f32, ref, atol=1e-4, rtol=1e-4), "f32 mismatch vs reference"

    # --- bf16 matmul-input run (default MXU path on all TPU generations) -------------
    fused_bf16 = fuse_additive_weights(p_w, p_b, w1_w, w1_b, w2_w, w2_b,
                                       compute_dtype=jnp.bfloat16)
    out_bf16 = jax.block_until_ready(
        multihead_generalized_pooling_additive(tokens, mask, *fused_bf16))
    assert out_bf16.shape == (B, sentence_dim)
    assert jnp.allclose(out_bf16, ref, atol=3e-2, rtol=3e-2), "bf16 mismatch vs reference"

    # --- MEAN / MAX pooling paths (mask ignored, matching the PyTorch module) --------
    out_mean = jax.block_until_ready(
        multihead_generalized_pooling_reduce(tokens, op="mean"))
    out_max = jax.block_until_ready(
        multihead_generalized_pooling_reduce(tokens, op="max"))
    assert jnp.allclose(out_mean, jnp.mean(tokens, axis=1), atol=1e-5, rtol=1e-5)
    assert jnp.allclose(out_max, jnp.max(tokens, axis=1), atol=1e-5, rtol=1e-5)

    print("KERNEL_OK")
</pallas_src>

<mosaic_0001>
module attributes {stable_mosaic.version = 11 : i64} {
  func.func @_fused_additive_kernel(%arg0: i32, %arg1: memref<8x16x64xf32, #tpu.memory_space<vmem>>, %arg2: memref<8x16x1xf32, #tpu.memory_space<vmem>>, %arg3: memref<64x64xf32, #tpu.memory_space<vmem>>, %arg4: memref<1x64xf32, #tpu.memory_space<vmem>>, %arg5: memref<64x256xf32, #tpu.memory_space<vmem>>, %arg6: memref<1x256xf32, #tpu.memory_space<vmem>>, %arg7: memref<256x64xf32, #tpu.memory_space<vmem>>, %arg8: memref<1x64xf32, #tpu.memory_space<vmem>>, %arg9: memref<8x64xf32, #tpu.memory_space<vmem>>) attributes {dimension_semantics = [#tpu.dimension_semantics<parallel>], iteration_bounds = array<i64: 2>, scalar_prefetch = 0 : i64, scratch_operands = 0 : i64, tpu.core_type = #tpu.core_type<tc>, window_params = [{transform_indices = @transform_0, window_bounds = array<i64: 8, 16, 64>}, {transform_indices = @transform_1, window_bounds = array<i64: 8, 16, 1>}, {pipeline_mode = #tpu.pipeline_mode<synchronous>, transform_indices = @transform_2, window_bounds = array<i64: 64, 64>}, {pipeline_mode = #tpu.pipeline_mode<synchronous>, transform_indices = @transform_3, window_bounds = array<i64: 1, 64>}, {pipeline_mode = #tpu.pipeline_mode<synchronous>, transform_indices = @transform_4, window_bounds = array<i64: 64, 256>}, {pipeline_mode = #tpu.pipeline_mode<synchronous>, transform_indices = @transform_5, window_bounds = array<i64: 1, 256>}, {pipeline_mode = #tpu.pipeline_mode<synchronous>, transform_indices = @transform_6, window_bounds = array<i64: 256, 64>}, {pipeline_mode = #tpu.pipeline_mode<synchronous>, transform_indices = @transform_7, window_bounds = array<i64: 1, 64>}, {transform_indices = @transform_8, window_bounds = array<i64: 8, 64>}]} {
    %c0 = arith.constant 0 : index
    %c0_0 = arith.constant 0 : index
    %c0_1 = arith.constant 0 : index
    %0 = vector.load %arg1[%c0, %c0_0, %c0_1] : memref<8x16x64xf32, #tpu.memory_space<vmem>>, vector<8x16x64xf32>
    %1 = vector.shape_cast %0 : vector<8x16x64xf32> to vector<128x64xf32>
    %c0_2 = arith.constant 0 : index
    %c0_3 = arith.constant 0 : index
    %2 = vector.load %arg3[%c0_2, %c0_3] : memref<64x64xf32, #tpu.memory_space<vmem>>, vector<64x64xf32>
    %cst = arith.constant dense<0.000000e+00> : vector<128x64xf32>
    %3 = tpu.matmul %1, %2, %cst {dimension_numbers = #tpu.dot_dimension_numbers<[1], [0], [0], [1], [0, 0, 1, 1], [], []>} : vector<128x64xf32>, vector<64x64xf32>, vector<128x64xf32> -> vector<128x64xf32>
    %c0_4 = arith.constant 0 : index
    %c0_5 = arith.constant 0 : index
    %4 = vector.load %arg4[%c0_4, %c0_5] : memref<1x64xf32, #tpu.memory_space<vmem>>, vector<1x64xf32>
    %5 = vector.broadcast %4 : vector<1x64xf32> to vector<128x64xf32>
    %6 = arith.addf %3, %5 : vector<128x64xf32>
    %c0_6 = arith.constant 0 : index
    %c0_7 = arith.constant 0 : index
    %7 = vector.load %arg5[%c0_6, %c0_7] : memref<64x256xf32, #tpu.memory_space<vmem>>, vector<64x256xf32>
    %cst_8 = arith.constant dense<0.000000e+00> : vector<128x256xf32>
    %8 = tpu.matmul %6, %7, %cst_8 {dimension_numbers = #tpu.dot_dimension_numbers<[1], [0], [0], [1], [0, 0, 1, 1], [], []>} : vector<128x64xf32>, vector<64x256xf32>, vector<128x256xf32> -> vector<128x256xf32>
    %c0_9 = arith.constant 0 : index
    %c0_10 = arith.constant 0 : index
    %9 = vector.load %arg6[%c0_9, %c0_10] : memref<1x256xf32, #tpu.memory_space<vmem>>, vector<1x256xf32>
    %10 = vector.broadcast %9 : vector<1x256xf32> to vector<128x256xf32>
    %11 = arith.addf %8, %10 : vector<128x256xf32>
    %cst_11 = arith.constant 0.000000e+00 : f32
    %12 = vector.broadcast %cst_11 : f32 to vector<128x256xf32>
    %13 = arith.maximumf %11, %12 : vector<128x256xf32>
    %c0_12 = arith.constant 0 : index
    %c0_13 = arith.constant 0 : index
    %14 = vector.load %arg7[%c0_12, %c0_13] : memref<256x64xf32, #tpu.memory_space<vmem>>, vector<256x64xf32>
    %cst_14 = arith.constant dense<0.000000e+00> : vector<128x64xf32>
    %15 = tpu.matmul %13, %14, %cst_14 {dimension_numbers = #tpu.dot_dimension_numbers<[1], [0], [0], [1], [0, 0, 1, 1], [], []>} : vector<128x256xf32>, vector<256x64xf32>, vector<128x64xf32> -> vector<128x64xf32>
    %c0_15 = arith.constant 0 : index
    %c0_16 = arith.constant 0 : index
    %16 = vector.load %arg8[%c0_15, %c0_16] : memref<1x64xf32, #tpu.memory_space<vmem>>, vector<1x64xf32>
    %17 = vector.broadcast %16 : vector<1x64xf32> to vector<128x64xf32>
    %18 = arith.addf %15, %17 : vector<128x64xf32>
    %19 = vector.shape_cast %18 : vector<128x64xf32> to vector<8x16x64xf32>
    %c0_17 = arith.constant 0 : index
    %c0_18 = arith.constant 0 : index
    %c0_19 = arith.constant 0 : index
    %20 = vector.load %arg2[%c0_17, %c0_18, %c0_19] : memref<8x16x1xf32, #tpu.memory_space<vmem>>, vector<8x16x1xf32>
    %21 = vector.broadcast %20 : vector<8x16x1xf32> to vector<8x16x64xf32>
    %22 = arith.addf %19, %21 : vector<8x16x64xf32>
    %23 = vector.shape_cast %6 : vector<128x64xf32> to vector<8x16x64xf32>
    %cst_20 = arith.constant dense<0xFF800000> : vector<8x64xf32>
    %24 = vector.multi_reduction <maximumf>, %22, %cst_20 [1] : vector<8x16x64xf32> to vector<8x64xf32>
    %25 = vector.shape_cast %24 : vector<8x64xf32> to vector<8x1x64xf32>
    %26 = vector.broadcast %25 : vector<8x1x64xf32> to vector<8x16x64xf32>
    %27 = arith.subf %22, %26 : vector<8x16x64xf32>
    %28 = math.exp %27 : vector<8x16x64xf32>
    %cst_21 = arith.constant dense<0.000000e+00> : vector<8x64xf32>
    %29 = vector.multi_reduction <add>, %28, %cst_21 [1] : vector<8x16x64xf32> to vector<8x64xf32>
    %30 = arith.mulf %23, %28 : vector<8x16x64xf32>
    %cst_22 = arith.constant dense<0.000000e+00> : vector<8x64xf32>
    %31 = vector.multi_reduction <add>, %30, %cst_22 [1] : vector<8x16x64xf32> to vector<8x64xf32>
    %cst_23 = arith.constant 1.000000e+00 : f32
    %32 = vector.broadcast %cst_23 : f32 to vector<8x64xf32>
    %33 = arith.divf %32, %29 : vector<8x64xf32>
    %34 = arith.mulf %31, %33 : vector<8x64xf32>
    %c0_24 = arith.constant 0 : index
    %c0_25 = arith.constant 0 : index
    %35 = vector.load %arg9[%c0_24, %c0_25] : memref<8x64xf32, #tpu.memory_space<vmem>>, vector<8x64xf32>
    tpu.vector_store %arg9[%c0_24, %c0_25], %34 {strides = array<i32>} : memref<8x64xf32, #tpu.memory_space<vmem>>, vector<8x64xf32>,
    return
  }
  func.func @transform_0(%arg0: i32) -> (i32, i32, i32) {
    %c0_i32 = arith.constant 0 : i32
    %c0_i32_0 = arith.constant 0 : i32
    %c0_i32_1 = arith.constant 0 : i32
    return %arg0, %c0_i32, %c0_i32_0 : i32, i32, i32
  }
  func.func @transform_1(%arg0: i32) -> (i32, i32, i32) {
    %c0_i32 = arith.constant 0 : i32
    %c0_i32_0 = arith.constant 0 : i32
    %c0_i32_1 = arith.constant 0 : i32
    return %arg0, %c0_i32, %c0_i32_0 : i32, i32, i32
  }
  func.func @transform_2(%arg0: i32) -> (i32, i32) {
    %c0_i32 = arith.constant 0 : i32
    %c0_i32_0 = arith.constant 0 : i32
    %c0_i32_1 = arith.constant 0 : i32
    return %c0_i32, %c0_i32_0 : i32, i32
  }
  func.func @transform_3(%arg0: i32) -> (i32, i32) {
    %c0_i32 = arith.constant 0 : i32
    %c0_i32_0 = arith.constant 0 : i32
    %c0_i32_1 = arith.constant 0 : i32
    return %c0_i32, %c0_i32_0 : i32, i32
  }
  func.func @transform_4(%arg0: i32) -> (i32, i32) {
    %c0_i32 = arith.constant 0 : i32
    %c0_i32_0 = arith.constant 0 : i32
    %c0_i32_1 = arith.constant 0 : i32
    return %c0_i32, %c0_i32_0 : i32, i32
  }
  func.func @transform_5(%arg0: i32) -> (i32, i32) {
    %c0_i32 = arith.constant 0 : i32
    %c0_i32_0 = arith.constant 0 : i32
    %c0_i32_1 = arith.constant 0 : i32
    return %c0_i32, %c0_i32_0 : i32, i32
  }
  func.func @transform_6(%arg0: i32) -> (i32, i32) {
    %c0_i32 = arith.constant 0 : i32
    %c0_i32_0 = arith.constant 0 : i32
    %c0_i32_1 = arith.constant 0 : i32
    return %c0_i32, %c0_i32_0 : i32, i32
  }
  func.func @transform_7(%arg0: i32) -> (i32, i32) {
    %c0_i32 = arith.constant 0 : i32
    %c0_i32_0 = arith.constant 0 : i32
    %c0_i32_1 = arith.constant 0 : i32
    return %c0_i32, %c0_i32_0 : i32, i32
  }
  func.func @transform_8(%arg0: i32) -> (i32, i32) {
    %c0_i32 = arith.constant 0 : i32
    %c0_i32_0 = arith.constant 0 : i32
    return %arg0, %c0_i32 : i32, i32
  }
}

</mosaic_0001>

<bundles_post_ra>
// kernel: multihead_generalized_pooling_additive.1
= control target key start
LH: loop header
LB: loop body
LE: loop exit
PB: predicated region body
PF: predicated region fallthrough
CT: control target
= control target key end

     0   :  { %13 = vsyncpa [#allocation3], 0  ;;  %s2627_s0 = inlined_call_operand.vmem [shape: f32[16,16,64], index: 0, kind: input, shape index: {}]   ;;  %s2628_s1 = inlined_call_operand.vmem [shape: f32[16,16,1], index: 1, kind: input, shape index: {}]   ;;  %s2629_s2 = inlined_call_operand.vmem [shape: f32[64,64], index: 2, kind: input, shape index: {}]   ;;  %s2630_s3 = inlined_call_operand.vmem [shape: f32[1,64], index: 3, kind: input, shape index: {}]   ;;  %s2631_s4 = inlined_call_operand.vmem [shape: f32[64,256], index: 4, kind: input, shape index: {}]   ;;  %s2632_s5 = inlined_call_operand.vmem [shape: f32[1,256], index: 5, kind: input, shape index: {}]   ;;  %s2633_s6 = inlined_call_operand.vmem [shape: f32[256,64], index: 6, kind: input, shape index: {}]   ;;  %s2634_s7 = inlined_call_operand.vmem [shape: f32[1,64], index: 7, kind: input, shape index: {}]   ;;  %s2635_s8 = inlined_call_operand.hbm [shape: f32[16,64], index: 8, kind: output, shape index: {}]  }
   0x1   :  { %15 = vsyncpa [#allocation3 + $0x1], 0  ;;  %s2015_s27 = smov 0   ;;  %s2017_s28 = smov 0  }
   0x2   :  { %s2019_s29 = smov 0   ;;  %s2021_s30 = smov 0  }
   0x3 LB: > { %s2036_s9 = sadd.s32 4294967295, %s1965_s30   ;;  %s1537_s10 = sadd.s32 4294967294, %s1965_s30   ;;  %s1965_s30 = sphi %s2021_s30, %s2641_s30   ;;  %s1961_s29 = sphi %s2019_s29, %s2640_s29   ;;  %s1957_s28 = sphi %s2017_s28, %s2639_s28   ;;  %s1953_s27 = sphi %s2015_s27, %s2638_s27  }
   0x4   : > { %s2040_s11 = sadd.s32 1, %s1965_s30   ;;  %s206_s12 = sadd.s32 1, %s1961_s29 }
   0x5   : > { %s203_s13 = ssub.s32 %s1965_s30, %s2040_s11  ;;  %p216_p0 = scmp.ne.s32.totalorder %s1961_s29, %s1957_s28 }
   0x6   : > { %p204_p1 = scmp.eq.s32.totalorder %s203_s13, 0  ;;  %p217_p2 = scmp.eq.s32.totalorder %s2036_s9, 1 }
   0x7   : > { %p222_p3 = scmp.ne.s32.totalorder %s1957_s28, %s1953_s27  ;;  %p223_p4 = scmp.eq.s32.totalorder %s1537_s10, 1 }
   0x8   : > { %s2051_s14 = scalar_select %p204_p1, %s1961_s29, %s206_s12  }
   0x9   : > { %p2053_p5 = por %p217_p2, %p216_p0  ;;  %p2057_p6 = por %p223_p4, %p222_p3 }
   0xa   : > { %p1540_p7 = scmp.ge.s32.totalorder %s1965_s30, 1  ;;  %p279_p8 = scmp.lt.s32.totalorder %s1965_s30, 3 }
   0xc   : > { %p280_p9 = pnand %p1540_p7, %p279_p8 }
   0xd   : > { %v350_v0 = vld [vmem:[%s2629_s2] sm:$0xff] (!%p280_p9)  ;;  %v351_v1 = vld [vmem:[%s2629_s2 + $0x8] sm:$0xff] (!%p280_p9)  ;;  %v352_v2 = vld [vmem:[%s2629_s2 + $0x10] sm:$0xff] (!%p280_p9)  ;;  %s1542_s23 = sshll.u32 (!%p280_p9), %s2036_s9, 3  ;;  %vm365_vm0 = vcmask (!%p280_p9), 523264   ;;  %v1967_v52 = vmov (!%p280_p9), 0.0  }
   0xe   : > { %283 = sbr.rel (%p280_p9) target bundleno = 829 (0x33d), region = 52  ;;  %v1732_v3 = vpack.c.bf16 (!%p280_p9), %v351_v1, %v350_v0  ;;  %v353_v4 = vld [vmem:[%s2629_s2 + $0x18] sm:$0xff] (!%p280_p9)  ;;  %p321_p10 = scmp.lt.s32.totalorder (!%p280_p9), %s1542_s23, 15  ;;  %v354_v6 = vld [vmem:[%s2629_s2 + $0x20] sm:$0xff] (!%p280_p9)  ;;  %v355_v7 = vld [vmem:[%s2629_s2 + $0x28] sm:$0xff] (!%p280_p9)  ;;  %699 = vmatprep.mubr.f32.mxu1 (!%p280_p9), %v1967_v52  ;;  %vm1436_vm1 = vcmask (!%p280_p9), 1041409  }
   0xf   : > { %v1736_v5 = vpack.c.bf16 (!%p280_p9), %v353_v4, %v352_v2  ;;  %v560_v8 = vld [vmem:[%s2631_s4 + $0x8] sm:$0xff] (!%p280_p9)  ;;  %v562_v9 = vld [vmem:[%s2631_s4 + $0x18] sm:$0xff] (!%p280_p9)  ;;  %v559_v10 = vld [vmem:[%s2631_s4] sm:$0xff] (!%p280_p9)  ;;  %v1740_v17 = vpack.c.bf16 (!%p280_p9), %v355_v7, %v354_v6  ;;  %vm1438_vm2 = vcmask (!%p280_p9), 1042434   ;;  %vm1440_vm3 = vcmask (!%p280_p9), 1043459   ;;  %s317_s13 = sand.u32 (!%p280_p9), 1, %s1957_s28  }
  0x10   : > { %1733 = vmatprep.subr.bf16.mxu0 (!%p280_p9), %v1732_v3  ;;  %v561_v11 = vld [vmem:[%s2631_s4 + $0x10] sm:$0xff] (!%p280_p9)  ;;  %v1748_v12 = vpack.c.bf16 (!%p280_p9), %v562_v9, %v560_v8  ;;  %v564_v14 = vld [vmem:[%s2631_s4 + $0x28] sm:$0xff] (!%p280_p9)  ;;  %v566_v15 = vld [vmem:[%s2631_s4 + $0x38] sm:$0xff] (!%p280_p9)  ;;  %vm1442_vm4 = vcmask (!%p280_p9), 1044484   ;;  %vm1444_vm5 = vcmask (!%p280_p9), 1045509   ;;  %s1541_s17 = sshll.u32 (!%p280_p9), %s317_s13, 3 }
  0x11   : > { %1735 = vmatpush3.bf16.msra.mxu0 (!%p280_p9), %v1732_v3  ;;  %v1750_v13 = vpack.c.bf16 (!%p280_p9), %v561_v11, %v559_v10  ;;  %v563_v16 = vld [vmem:[%s2631_s4 + $0x20] sm:$0xff] (!%p280_p9)  ;;  %v1752_v18 = vpack.c.bf16 (!%p280_p9), %v566_v15, %v564_v14  ;;  %v565_v19 = vld [vmem:[%s2631_s4 + $0x30] sm:$0xff] (!%p280_p9)  ;;  %v568_v20 = vld [vmem:[%s2631_s4 + $0x48] sm:$0xff] (!%p280_p9)  ;;  %vm1446_vm6 = vcmask (!%p280_p9), 1046534   ;;  %s1583_s18 = sshll.u32 (!%p280_p9), %s2036_s9, 7  ;;  %s319_s20 = scalar_lea.vmem (!%p280_p9), [#allocation2], %s1541_s17 }
  0x12   : > { %1737 = vmatprep.subr.bf16.mxu0 (!%p280_p9), %v1736_v5  ;;  %v570_v21 = vld [vmem:[%s2631_s4 + $0x58] sm:$0xff] (!%p280_p9)  ;;  %v356_v22 = vld [vmem:[%s2629_s2 + $0x30] sm:$0xff] (!%p280_p9)  ;;  %1749 = vmatprep.subr.bf16.mxu1 (!%p280_p9), %v1748_v12  ;;  %v1754_v25 = vpack.c.bf16 (!%p280_p9), %v565_v19, %v563_v16  ;;  %v567_v27 = vld [vmem:[%s2631_s4 + $0x40] sm:$0xff] (!%p280_p9)  ;;  %s1466_s22 = sshll.u32 (!%p280_p9), %s319_s20, 4  ;;  %vm1448_vm7 = vcmask (!%p280_p9), 1047559   ;;  %s2584_s25 = scalar_lea.hbm (!%p280_p9), %s2635_s8, %s1583_s18  ;;  %s2586_s22 = int_to_ptr.vmem [resolvable:$true] %s1466_s22 }
  0x13   : > { %v357_v23 = vld [vmem:[%s2629_s2 + $0x38] sm:$0xff] (!%p280_p9)  ;;  %1751 = vmatpush1.bf16.msra.mxu1 (!%p280_p9), %v1750_v13  ;;  %v1756_v26 = vpack.c.bf16 (!%p280_p9), %v570_v21, %v568_v20  ;;  %v569_v28 = vld [vmem:[%s2631_s4 + $0x50] sm:$0xff] (!%p280_p9)  ;;  %v572_v46 = vld [vmem:[%s2631_s4 + $0x68] sm:$0xff] (!%p280_p9)  ;;  %s1903_s9 = scalar_lea.vmem (!%p280_p9), %s2586_s22, 128 }
  0x14   : > { %v1744_v29 = vpack.c.bf16 (!%p280_p9), %v357_v23, %v356_v22  ;;  %1753 = vmatprep.subr.bf16.mxu1 (!%p280_p9), %v1752_v18  ;;  %v1758_v30 = vpack.c.bf16 (!%p280_p9), %v569_v28, %v567_v27  ;;  %v574_v47 = vld [vmem:[%s2631_s4 + $0x78] sm:$0xff] (!%p280_p9)  ;;  %v571_v49 = vld [vmem:[%s2631_s4 + $0x60] sm:$0xff] (!%p280_p9)  ;;  %v573_v50 = vld [vmem:[%s2631_s4 + $0x70] sm:$0xff] (!%p280_p9)  ;;  %p1904_p11 = scmp.ne.s32.totalorder (!%p280_p9), %s2586_s22, %s1903_s9 }
  0x15   : > { %s2643_s23 = smov (!%p321_p10, %s1542_s23), 15  ;;  %1739 = vmatpush3.bf16.msra.mxu0 %v1736_v5  ;;  %v1760_v48 = vpack.c.bf16 %v574_v47, %v572_v46  ;;  %v1762_v51 = vpack.c.bf16 %v573_v50, %v571_v49  ;;  %v844_v53 = vld [vmem:[%s2633_s6 + $0x80] sm:$0xff]  ;;  %v845_v54 = vld [vmem:[%s2633_s6 + $0x88] sm:$0xff]  ;;  %v846_v58 = vld [vmem:[%s2633_s6 + $0x90] sm:$0xff] }
  0x16   : > { %s1586_s19 = sshll.u32 %s2643_s23, 4  ;;  %1741 = vmatprep.subr.bf16.mxu0 %v1740_v17  ;;  %v828_v55 = vld [vmem:[%s2633_s6] sm:$0xff]  ;;  %v1764_v56 = vpack.c.bf16 %v845_v54, %v844_v53  ;;  %v829_v57 = vld [vmem:[%s2633_s6 + $0x8] sm:$0xff]  ;;  %v847_v59 = vld [vmem:[%s2633_s6 + $0x98] sm:$0xff]  ;;  %p1905_p12 = pnand %p1904_p11, %p2053_p5 }
  0x17   : > { %s2126_s21 = scalar_lea.vmem %s2627_s0, %s1586_s19  ;;  %1755 = vmatpush1.bf16.msra.mxu1 %v1754_v25  ;;  %v1766_v60 = vpack.c.bf16 %v829_v57, %v828_v55  ;;  %v1768_v61 = vpack.c.bf16 %v847_v59, %v846_v58  ;;  %v830_v62 = vld [vmem:[%s2633_s6 + $0x10] sm:$0xff]  ;;  %v831_v63 = vld [vmem:[%s2633_s6 + $0x18] sm:$0xff]  ;;  %v848_v0 = vld [vmem:[%s2633_s6 + $0xa0] sm:$0xff]  ;;  %s2380_s26 = scalar_lea.vmem %s2628_s1, %s1586_s19 }
  0x18   : > { %v334_v24 = vld [vmem:[%s2126_s21] sm:$0xff]  ;;  %1757 = vmatprep.subr.bf16.mxu1 %v1756_v26  ;;  %v335_v31 = vld [vmem:[%s2126_s21 + $0x8] sm:$0xff]  ;;  %v336_v32 = vld [vmem:[%s2126_s21 + $0x10] sm:$0xff]  ;;  %v1770_v2 = vpack.c.bf16 %v831_v63, %v830_v62  ;;  %p1906_p13 = pneg %p1905_p12  ;;  %s1969_s23 = smov [#allocation2]  }
  0x19   : > { %1708 = vmatprep.mubr.msk.f32.mxu0 %vm365_vm0, %v334_v24  ;;  %1743 = vmatpush3.bf16.msra.mxu0 %v1740_v17  ;;  %v337_v33 = vld [vmem:[%s2126_s21 + $0x18] sm:$0xff]  ;;  %v338_v34 = vld [vmem:[%s2126_s21 + $0x20] sm:$0xff]  ;;  %v339_v35 = vld [vmem:[%s2126_s21 + $0x28] sm:$0xff]  ;;  %s1907_s19 = sshll.u32 %s1969_s23, 4  ;;  %s1908_s19 = int_to_ptr.vmem [resolvable:$false] %s1907_s19 }
  0x1a   : > { %1745 = vmatprep.subr.bf16.mxu0 %v1744_v29  ;;  %v340_v36 = vld [vmem:[%s2126_s21 + $0x30] sm:$0xff]  ;;  %v341_v37 = vld [vmem:[%s2126_s21 + $0x38] sm:$0xff]  ;;  %v342_v38 = vld [vmem:[%s2126_s21 + $0x40] sm:$0xff]  ;;  %s1909_s10 = scalar_lea.vmem %s1908_s19, 256  ;;  %p1910_p0 = scmp.lt.s32.totalorder %s2586_s22, %s1908_s19 }
  0x1b   : > { %1759 = vmatpush1.bf16.msra.mxu1 %v1758_v30  ;;  %v343_v39 = vld [vmem:[%s2126_s21 + $0x48] sm:$0xff]  ;;  %v344_v40 = vld [vmem:[%s2126_s21 + $0x50] sm:$0xff]  ;;  %v345_v41 = vld [vmem:[%s2126_s21 + $0x58] sm:$0xff]  ;;  %p1911_p1 = scmp.lt.s32.totalorder %s1909_s10, %s1903_s9 }
  0x1c   : > { %v346_v42 = vld [vmem:[%s2126_s21 + $0x60] sm:$0xff]  ;;  %v347_v43 = vld [vmem:[%s2126_s21 + $0x68] sm:$0xff]  ;;  %v348_v44 = vld [vmem:[%s2126_s21 + $0x70] sm:$0xff]  ;;  %1761 = vmatprep.subr.bf16.mxu1 %v1760_v48 }
  0x1d   : > { %1747 = vmatpush3.bf16.msra.mxu0 %v1744_v29  ;;  %v349_v45 = vld [vmem:[%s2126_s21 + $0x78] sm:$0xff]  ;;  %v849_v1 = vld [vmem:[%s2633_s6 + $0xa8] sm:$0xff]  ;;  %v832_v4 = vld [vmem:[%s2633_s6 + $0x20] sm:$0xff]  ;;  %p1912_p2 = por %p1911_p1, %p1910_p0 }
  0x1e   : > { %1765 = vmatprep.subr.bf16.mxu0 %v1764_v56  ;;  %v1772_v3 = vpack.c.bf16 %v849_v1, %v848_v0  ;;  %v833_v5 = vld [vmem:[%s2633_s6 + $0x28] sm:$0xff]  ;;  %v850_v6 = vld [vmem:[%s2633_s6 + $0xb0] sm:$0xff]  ;;  %v851_v7 = vld [vmem:[%s2633_s6 + $0xb8] sm:$0xff] }
  0x1f   : > { %1763 = vmatpush1.bf16.msra.mxu1 %v1762_v51  ;;  %v1774_v8 = vpack.c.bf16 %v833_v5, %v832_v4  ;;  %v1776_v9 = vpack.c.bf16 %v851_v7, %v850_v6  ;;  %v834_v10 = vld [vmem:[%s2633_s6 + $0x30] sm:$0xff]  ;;  %v835_v11 = vld [vmem:[%s2633_s6 + $0x38] sm:$0xff]  ;;  %v852_v12 = vld [vmem:[%s2633_s6 + $0xc0] sm:$0xff]  ;;  %v1968_v6 = vmov 0   ;;  %p1913_p3 = pnand %p1912_p2, %p1906_p13 }
  0x20   : > { %1709 = vmatmul.mubr.msk.f32.vlgmr.msra.gmra.mrb[0].mxu0 %vm365_vm0, %v335_v31  ;;  %1796 = vmatprep.subr.bf16.mxu1 %v1764_v56  ;;  %v853_v13 = vld [vmem:[%s2633_s6 + $0xc8] sm:$0xff]  ;;  %v1778_v14 = vpack.c.bf16 %v835_v11, %v834_v10  ;;  %v836_v16 = vld [vmem:[%s2633_s6 + $0x40] sm:$0xff]  ;;  %v854_v18 = vld [vmem:[%s2633_s6 + $0xd0] sm:$0xff] }
  0x21   : > { %1711 = vmatprep.mubr.msk.f32.mxu0 %vm365_vm0, %v336_v32  ;;  %1767 = vmatpush3.bf16.msra.mxu0 %v1766_v60  ;;  %v1780_v15 = vpack.c.bf16 %v853_v13, %v852_v12  ;;  %v837_v17 = vld [vmem:[%s2633_s6 + $0x48] sm:$0xff]  ;;  %v855_v19 = vld [vmem:[%s2633_s6 + $0xd8] sm:$0xff]  ;;  %v838_v22 = vld [vmem:[%s2633_s6 + $0x50] sm:$0xff] }
  0x22   : > { %1769 = vmatprep.subr.bf16.mxu0 %v1768_v61  ;;  %v1782_v20 = vpack.c.bf16 %v837_v17, %v836_v16  ;;  %v1784_v21 = vpack.c.bf16 %v855_v19, %v854_v18  ;;  %v839_v23 = vld [vmem:[%s2633_s6 + $0x58] sm:$0xff]  ;;  %v856_v24 = vld [vmem:[%s2633_s6 + $0xe0] sm:$0xff]  ;;  %v857_v25 = vld [vmem:[%s2633_s6 + $0xe8] sm:$0xff]  ;;  %1853 = vset.pattern.permute.xlu0 %v1968_v6 }
  0x23   : > { %v1786_v26 = vpack.c.bf16 %v839_v23, %v838_v22  ;;  %v1788_v27 = vpack.c.bf16 %v857_v25, %v856_v24  ;;  %v2260_v28 = vld [vmem:[%s2630_s3] ss:$0 sm:$0xff]  ;;  %v841_v63 = vld [vmem:[%s2633_s6 + $0x68] sm:$0xff]  ;;  %v859_v1 = vld [vmem:[%s2633_s6 + $0xf8] sm:$0xff]  ;;  %1854 = vset.pattern.permute.xlu1 %v1968_v6  ;;  %v577_v23 = vlaneseq }
  0x24   : > { %1712 = vmatmul.mubr.msk.f32.gmra.mrb[2].mxu0 %vm365_vm0, %v337_v33  ;;  %v840_v62 = vld [vmem:[%s2633_s6 + $0x60] sm:$0xff]  ;;  %v843_v4 = vld [vmem:[%s2633_s6 + $0x78] sm:$0xff]  ;;  %v1017_v11 = vld [vmem:[%s2380_s26 + $0x28] sm:$0xff] }
  0x25   : > { %1714 = vmatprep.mubr.msk.f32.mxu0 %vm365_vm0, %v338_v34  ;;  %1771 = vmatpush3.bf16.msra.mxu0 %v1770_v2  ;;  %v1790_v0 = vpack.c.bf16 %v841_v63, %v840_v62  ;;  %v1012_v7 = vld [vmem:[%s2380_s26] sm:$0xff]  ;;  %v1015_v10 = vld [vmem:[%s2380_s26 + $0x18] sm:$0xff]  ;;  %v1022_v18 = vld [vmem:[%s2380_s26 + $0x50] sm:$0xff]  ;;  %v578_v24 = vshrl.u32 %v577_v23, 7 }
  0x26   : > { %1773 = vmatprep.subr.bf16.mxu0 %v1772_v3  ;;  %1030 = vperm.xlu0 %1853, %v1012_v7   ;;  %v1016_v12 = vld [vmem:[%s2380_s26 + $0x20] sm:$0xff]  ;;  %v1019_v13 = vld [vmem:[%s2380_s26 + $0x38] sm:$0xff]  ;;  %v1025_v19 = vld [vmem:[%s2380_s26 + $0x68] sm:$0xff] }
  0x27   : > { %v1020_v16 = vld [vmem:[%s2380_s26 + $0x40] sm:$0xff]  ;;  %v1023_v17 = vld [vmem:[%s2380_s26 + $0x58] sm:$0xff]  ;;  %v1026_v22 = vld [vmem:[%s2380_s26 + $0x70] sm:$0xff]  ;;  %v579_v25 = vsub.s32 0, %v578_v24 }
  0x28   : > { %1715 = vmatmul.mubr.msk.f32.gmra.mrb[4].mxu0 %vm365_vm0, %v339_v35 }
  0x29   : > { %1717 = vmatprep.mubr.msk.f32.mxu0 %vm365_vm0, %v340_v36  ;;  %1775 = vmatpush3.bf16.msra.mxu0 %v1774_v8 }
  0x2a   : > { %1777 = vmatprep.subr.bf16.mxu0 %v1776_v9 }
  0x2c   : > { %1718 = vmatmul.mubr.msk.f32.gmra.mrb[6].mxu0 %vm365_vm0, %v341_v37 }
  0x2d   : > { %1720 = vmatprep.mubr.msk.f32.mxu0 %vm365_vm0, %v342_v38  ;;  %1779 = vmatpush3.bf16.msra.mxu0 %v1778_v14 }
  0x2e   : > { %1781 = vmatprep.subr.bf16.mxu0 %v1780_v15 }
  0x30   : > { %1721 = vmatmul.mubr.msk.f32.gmra.mrb[8].mxu0 %vm365_vm0, %v343_v39 }
  0x31   : > { %1723 = vmatprep.mubr.msk.f32.mxu0 %vm365_vm0, %v344_v40  ;;  %1783 = vmatpush3.bf16.msra.mxu0 %v1782_v20 }
  0x32   : > { %1785 = vmatprep.subr.bf16.mxu0 %v1784_v21 }
  0x34   : > { %1724 = vmatmul.mubr.msk.f32.gmra.mrb[10].mxu0 %vm365_vm0, %v345_v41 }
  0x35   : > { %1726 = vmatprep.mubr.msk.f32.mxu0 %vm365_vm0, %v346_v42  ;;  %1787 = vmatpush3.bf16.msra.mxu0 %v1786_v26 }
  0x36   : > { %1789 = vmatprep.subr.bf16.mxu0 %v1788_v27 }
  0x38   : > { %1727 = vmatmul.mubr.msk.f32.gmra.mrb[12].mxu0 %vm365_vm0, %v347_v43 }
  0x39   : > { %1729 = vmatprep.mubr.msk.f32.mxu0 %vm365_vm0, %v348_v44  ;;  %1791 = vmatpush3.bf16.msra.mxu0 %v1790_v0 }
  0x3c   : > { %1730 = vmatmul.mubr.msk.f32.gmra.mrb[14].mxu0 %vm365_vm0, %v349_v45 }
  0xf3   : > { %v1710_v29 = vpop.f32.mrb[0].mxu0 }
  0xf4   : > { %v480_v30 = vpop.f32.mrb[1].mxu0  ;;  %v2269_v34 = vadd.f32 %v1710_v29, %v2260_v28 }
  0xf5   : > { %v2263_v31 = vadd.f32 %v2260_v28, %v480_v30 }
  0xf7   : > { %1565 = vmatmul.mubr.msk.f32.vlgmr.msra.gmra.mrb[0].mxu1 %vm365_vm0, %v2263_v31  ;;  %v1713_v32 = vpop.f32.mrb[2].mxu0 }
  0xf8   : > { %705 = vmatprep.mubr.f32.mxu1 %v1967_v52  ;;  %v490_v33 = vpop.f32.mrb[3].mxu0  ;;  %1804 = vmatpush3.bf16.msra.mxu1 %v1766_v60  ;;  %v2281_v40 = vadd.f32 %v1713_v32, %v2260_v28 }
  0xf9   : > { %1797 = vmatprep.subr.bf16.mxu1 %v1768_v61  ;;  %v2272_v35 = vadd.f32 %v2260_v28, %v490_v33 }
  0xfb   : > { %1566 = vmatmul.mubr.msk.f32.gmra.mrb[2].mxu1 %vm365_vm0, %v2269_v34  ;;  %v1716_v36 = vpop.f32.mrb[4].mxu0 }
  0xfc   : > { %711 = vmatprep.mubr.f32.mxu1 %v1967_v52  ;;  %v500_v37 = vpop.f32.mrb[5].mxu0  ;;  %1805 = vmatpush3.bf16.msra.mxu1 %v1770_v2  ;;  %v2293_v46 = vadd.f32 %v1716_v36, %v2260_v28 }
  0xfd   : > { %1798 = vmatprep.subr.bf16.mxu1 %v1772_v3  ;;  %v2284_v41 = vadd.f32 %v2260_v28, %v500_v37  ;;  %v842_v3 = vld [vmem:[%s2633_s6 + $0x70] sm:$0xff] }
  0xfe   : > { %v1794_v5 = vpack.c.bf16 %v843_v4, %v842_v3 }
  0xff   : > { %1567 = vmatmul.mubr.msk.f32.gmra.mrb[4].mxu1 %vm365_vm0, %v2272_v35  ;;  %v1719_v38 = vpop.f32.mrb[6].mxu0 }
 0x100   : > { %717 = vmatprep.mubr.f32.mxu1 %v1967_v52  ;;  %v510_v39 = vpop.f32.mrb[7].mxu0  ;;  %1806 = vmatpush3.bf16.msra.mxu1 %v1774_v8  ;;  %v2305_v53 = vadd.f32 %v1719_v38, %v2260_v28  ;;  %v1014_v8 = vld [vmem:[%s2380_s26 + $0x10] sm:$0xff] }
 0x101   : > { %1799 = vmatprep.subr.bf16.mxu1 %v1776_v9  ;;  %v2296_v47 = vadd.f32 %v2260_v28, %v510_v39  ;;  %1040 = vperm.xlu1 %1854, %v1014_v8   ;;  %v1013_v9 = vld [vmem:[%s2380_s26 + $0x8] sm:$0xff] }
 0x102   : > { %1035 = vperm.xlu0 %1853, %v1013_v9  }
 0x103   : > { %1568 = vmatmul.mubr.msk.f32.gmra.mrb[6].mxu1 %vm365_vm0, %v2281_v40  ;;  %v1722_v42 = vpop.f32.mrb[8].mxu0 }
 0x104   : > { %723 = vmatprep.mubr.f32.mxu1 %v1967_v52  ;;  %v520_v43 = vpop.f32.mrb[9].mxu0  ;;  %1807 = vmatpush3.bf16.msra.mxu1 %v1778_v14  ;;  %v2317_v55 = vadd.f32 %v1722_v42, %v2260_v28  ;;  %v1018_v14 = vld [vmem:[%s2380_s26 + $0x30] sm:$0xff] }
 0x105   : > { %1800 = vmatprep.subr.bf16.mxu1 %v1780_v15  ;;  %v2308_v54 = vadd.f32 %v2260_v28, %v520_v43  ;;  %1045 = vperm.xlu1 %1854, %v1015_v10   ;;  %v1021_v15 = vld [vmem:[%s2380_s26 + $0x48] sm:$0xff] }
 0x106   : > { %1050 = vperm.xlu0 %1853, %v1016_v12  }
 0x107   : > { %1569 = vmatmul.mubr.msk.f32.gmra.mrb[8].mxu1 %vm365_vm0, %v2284_v41  ;;  %v1725_v44 = vpop.f32.mrb[10].mxu0 }
 0x108   : > { %729 = vmatprep.mubr.f32.mxu1 %v1967_v52  ;;  %v530_v45 = vpop.f32.mrb[11].mxu0  ;;  %1808 = vmatpush3.bf16.msra.mxu1 %v1782_v20  ;;  %v2329_v57 = vadd.f32 %v1725_v44, %v2260_v28  ;;  %v1024_v20 = vld [vmem:[%s2380_s26 + $0x60] sm:$0xff] }
 0x109   : > { %1801 = vmatprep.subr.bf16.mxu1 %v1784_v21  ;;  %v2320_v56 = vadd.f32 %v2260_v28, %v530_v45  ;;  %1055 = vperm.xlu1 %1854, %v1017_v11   ;;  %v1027_v21 = vld [vmem:[%s2380_s26 + $0x78] sm:$0xff]  ;;  %s1453_s26 = scalar_lea.sflag [#allocation3], %s317_s13 }
 0x10a   : > { %1060 = vperm.xlu0 %1853, %v1018_v14  }
 0x10b   : > { %1570 = vmatmul.mubr.msk.f32.gmra.mrb[10].mxu1 %vm365_vm0, %v2293_v46  ;;  %v1728_v48 = vpop.f32.mrb[12].mxu0 }
 0x10c   : > { %735 = vmatprep.mubr.f32.mxu1 %v1967_v52  ;;  %v540_v49 = vpop.f32.mrb[13].mxu0  ;;  %1809 = vmatpush3.bf16.msra.mxu1 %v1786_v26  ;;  %v2341_v59 = vadd.f32 %v1728_v48, %v2260_v28  ;;  %v575_v26 = vld [vmem:[%s2632_s5] sm:$0x3] }
 0x10d   : > { %1802 = vmatprep.subr.bf16.mxu1 %v1788_v27  ;;  %v2332_v58 = vadd.f32 %v2260_v28, %v540_v49  ;;  %1065 = vperm.xlu1 %1854, %v1019_v13   ;;  %v583_v27 = vsub.s32 1, %v578_v24 }
 0x10e   : > { %1070 = vperm.xlu0 %1853, %v1020_v16  }
 0x10f   : > { %1571 = vmatmul.mubr.msk.f32.gmra.mrb[12].mxu1 %vm365_vm0, %v2296_v47  ;;  %v1731_v50 = vpop.f32.mrb[14].mxu0  ;;  %v2403_v29 = vrot.slane %v575_v26, %v583_v27 }
 0x110   : > { %741 = vmatprep.mubr.f32.mxu1 %v1967_v52  ;;  %v550_v51 = vpop.f32.mrb[15].mxu0  ;;  %v2353_v61 = vadd.f32 %v1731_v50, %v2260_v28  ;;  %1810 = vmatpush3.bf16.msra.mxu1 %v1790_v0 }
 0x111   : > { %v2344_v60 = vadd.f32 %v2260_v28, %v550_v51  ;;  %1075 = vperm.xlu1 %1854, %v1021_v15   ;;  %v2401_v28 = vrot.slane %v575_v26, %v579_v25 }
 0x112   : > { %1080 = vperm.xlu0 %1853, %v1022_v18  }
 0x113   : > { %1572 = vmatmul.mubr.msk.f32.gmra.mrb[14].mxu1 %vm365_vm0, %v2305_v53 }
 0x114   : > { %747 = vmatprep.mubr.f32.mxu1 %v1967_v52 }
 0x115   : > { %1085 = vperm.xlu1 %1854, %v1023_v17  }
 0x116   : > { %1090 = vperm.xlu0 %1853, %v1024_v20  }
 0x117   : > { %1573 = vmatmul.mubr.msk.f32.gmra.mrb[16].mxu1 %vm365_vm0, %v2308_v54 }
 0x118   : > { %753 = vmatprep.mubr.f32.mxu1 %v1967_v52 }
 0x119   : > { %1095 = vperm.xlu1 %1854, %v1025_v19  }
 0x11a   : > { %1100 = vperm.xlu0 %1853, %v1026_v22  }
 0x11b   : > { %1574 = vmatmul.mubr.msk.f32.gmra.mrb[18].mxu1 %vm365_vm0, %v2317_v55 }
 0x11c   : > { %759 = vmatprep.mubr.f32.mxu1 %v1967_v52 }
 0x11d   : > { %1105 = vperm.xlu1 %1854, %v1027_v21  }
 0x11f   : > { %1575 = vmatmul.mubr.msk.f32.gmra.mrb[20].mxu1 %vm365_vm0, %v2320_v56 }
 0x120   : > { %765 = vmatprep.mubr.f32.mxu1 %v1967_v52 }
 0x123   : > { %1576 = vmatmul.mubr.msk.f32.gmra.mrb[22].mxu1 %vm365_vm0, %v2329_v57 }
 0x124   : > { %771 = vmatprep.mubr.f32.mxu1 %v1967_v52 }
 0x127   : > { %1577 = vmatmul.mubr.msk.f32.gmra.mrb[24].mxu1 %vm365_vm0, %v2332_v58 }
 0x128   : > { %777 = vmatprep.mubr.f32.mxu1 %v1967_v52 }
 0x12b   : > { %1578 = vmatmul.mubr.msk.f32.gmra.mrb[26].mxu1 %vm365_vm0, %v2341_v59 }
 0x12c   : > { %783 = vmatprep.mubr.f32.mxu1 %v1967_v52 }
 0x12f   : > { %1579 = vmatmul.mubr.msk.f32.gmra.mrb[28].mxu1 %vm365_vm0, %v2344_v60 }
 0x130   : > { %789 = vmatprep.mubr.f32.mxu1 %v1967_v52  ;;  %v858_v52 = vld [vmem:[%s2633_s6 + $0xf0] sm:$0xff] }
 0x131   : > { %v1792_v2 = vpack.c.bf16 %v859_v1, %v858_v52 }
 0x133   : > { %1580 = vmatmul.mubr.msk.f32.gmra.mrb[30].mxu1 %vm365_vm0, %v2353_v61  ;;  %1793 = vmatprep.subr.bf16.mxu0 %v1792_v2 }
 0x134   : > { %1803 = vmatprep.subr.bf16.mxu1 %v1792_v2  ;;  %1795 = vmatpush3.bf16.msra.mxu0 %v1794_v5 }
 0x135   : > { %1811 = vmatpush3.bf16.msra.mxu1 %v1794_v5 }
 0x1ca   : > { %v701_v30 = vpop.f32.mrb[0].mxu1 }
 0x1cb   : > { %v702_v32 = vadd.f32 %v701_v30, %v2401_v28  ;;  %v703_v33 = vpop.f32.mrb[1].mxu1 }
 0x1cc   : > { %v704_v36 = vadd.f32 %v703_v33, %v2403_v29 }
 0x1cd   : > { %v796_v39 = vmax.f32 %v702_v32, 0.0 }
 0x1ce   : > { %v797_v37 = vmax.f32 %v704_v36, 0.0  ;;  %v707_v38 = vpop.f32.mrb[2].mxu1 }
 0x1cf   : > { %v708_v42 = vadd.f32 %v707_v38, %v2401_v28  ;;  %v709_v43 = vpop.f32.mrb[3].mxu1 }
 0x1d0   : > { %v710_v44 = vadd.f32 %v709_v43, %v2403_v29  ;;  %931 = vmatprep.mubr.f32.mxu0 %v797_v37 }
 0x1d1   : > { %932 = vmatmul.mubr.f32.vlgmr.msra.gmra.mrb[16].mxu0 %v796_v39  ;;  %v798_v49 = vmax.f32 %v708_v42, 0.0 }
 0x1d2   : > { %v799_v45 = vmax.f32 %v710_v44, 0.0  ;;  %v713_v48 = vpop.f32.mrb[4].mxu1 }
 0x1d3   : > { %v714_v50 = vadd.f32 %v713_v48, %v2401_v28  ;;  %v715_v51 = vpop.f32.mrb[5].mxu1 }
 0x1d4   : > { %v716_v62 = vadd.f32 %v715_v51, %v2403_v29  ;;  %936 = vmatprep.mubr.f32.mxu0 %v799_v45 }
 0x1d5   : > { %937 = vmatmul.mubr.f32.gmra.mrb[18].mxu0 %v798_v49  ;;  %v800_v52 = vmax.f32 %v714_v50, 0.0 }
 0x1d6   : > { %v801_v63 = vmax.f32 %v716_v62, 0.0  ;;  %v719_v0 = vpop.f32.mrb[6].mxu1 }
 0x1d7   : > { %v720_v1 = vadd.f32 %v719_v0, %v2401_v28  ;;  %v721_v2 = vpop.f32.mrb[7].mxu1 }
 0x1d8   : > { %v722_v3 = vadd.f32 %v721_v2, %v2403_v29  ;;  %941 = vmatprep.mubr.f32.mxu0 %v801_v63 }
 0x1d9   : > { %942 = vmatmul.mubr.f32.gmra.mrb[20].mxu0 %v800_v52  ;;  %v802_v6 = vmax.f32 %v720_v1, 0.0 }
 0x1da   : > { %v803_v4 = vmax.f32 %v722_v3, 0.0  ;;  %v725_v5 = vpop.f32.mrb[8].mxu1 }
 0x1db   : > { %v726_v7 = vadd.f32 %v725_v5, %v2401_v28  ;;  %v727_v8 = vpop.f32.mrb[9].mxu1 }
 0x1dc   : > { %v728_v9 = vadd.f32 %v727_v8, %v2403_v29  ;;  %946 = vmatprep.mubr.f32.mxu0 %v803_v4 }
 0x1dd   : > { %947 = vmatmul.mubr.f32.gmra.mrb[22].mxu0 %v802_v6  ;;  %v804_v12 = vmax.f32 %v726_v7, 0.0 }
 0x1de   : > { %v805_v10 = vmax.f32 %v728_v9, 0.0  ;;  %v731_v11 = vpop.f32.mrb[10].mxu1 }
 0x1df   : > { %v732_v13 = vadd.f32 %v731_v11, %v2401_v28  ;;  %v733_v14 = vpop.f32.mrb[11].mxu1 }
 0x1e0   : > { %v734_v15 = vadd.f32 %v733_v14, %v2403_v29  ;;  %951 = vmatprep.mubr.f32.mxu0 %v805_v10 }
 0x1e1   : > { %952 = vmatmul.mubr.f32.gmra.mrb[24].mxu0 %v804_v12  ;;  %v806_v18 = vmax.f32 %v732_v13, 0.0 }
 0x1e2   : > { %v807_v16 = vmax.f32 %v734_v15, 0.0  ;;  %v737_v17 = vpop.f32.mrb[12].mxu1 }
 0x1e3   : > { %v738_v19 = vadd.f32 %v737_v17, %v2401_v28  ;;  %v739_v20 = vpop.f32.mrb[13].mxu1 }
 0x1e4   : > { %v740_v21 = vadd.f32 %v739_v20, %v2403_v29  ;;  %956 = vmatprep.mubr.f32.mxu0 %v807_v16 }
 0x1e5   : > { %957 = vmatmul.mubr.f32.gmra.mrb[26].mxu0 %v806_v18  ;;  %v808_v24 = vmax.f32 %v738_v19, 0.0 }
 0x1e6   : > { %v809_v22 = vmax.f32 %v740_v21, 0.0  ;;  %v743_v23 = vpop.f32.mrb[14].mxu1 }
 0x1e7   : > { %v744_v25 = vadd.f32 %v743_v23, %v2401_v28  ;;  %v745_v26 = vpop.f32.mrb[15].mxu1 }
 0x1e8   : > { %v746_v27 = vadd.f32 %v745_v26, %v2403_v29  ;;  %961 = vmatprep.mubr.f32.mxu0 %v809_v22 }
 0x1e9   : > { %962 = vmatmul.mubr.f32.gmra.mrb[28].mxu0 %v808_v24  ;;  %v810_v33 = vmax.f32 %v744_v25, 0.0 }
 0x1ea   : > { %v811_v30 = vmax.f32 %v746_v27, 0.0  ;;  %v749_v32 = vpop.f32.mrb[16].mxu1 }
 0x1eb   : > { %v750_v36 = vadd.f32 %v749_v32, %v2401_v28  ;;  %v751_v37 = vpop.f32.mrb[17].mxu1 }
 0x1ec   : > { %v752_v38 = vadd.f32 %v751_v37, %v2403_v29  ;;  %966 = vmatprep.mubr.f32.mxu0 %v811_v30 }
 0x1ed   : > { %967 = vmatmul.mubr.f32.gmra.mrb[30].mxu0 %v810_v33  ;;  %v812_v43 = vmax.f32 %v750_v36, 0.0 }
 0x1ee   : > { %v813_v39 = vmax.f32 %v752_v38, 0.0  ;;  %v755_v42 = vpop.f32.mrb[18].mxu1 }
 0x1ef   : > { %v756_v44 = vadd.f32 %v755_v42, %v2401_v28  ;;  %v757_v45 = vpop.f32.mrb[19].mxu1  ;;  %v1031_v42 = vpop.permute.xlu0 %1030 }
 0x1f0   : > { %v758_v48 = vadd.f32 %v757_v45, %v2403_v29  ;;  %971 = vmatprep.mubr.f32.mxu0 %v813_v39  ;;  %v2440_v39 = vld [vmem:[%s2634_s7] ss:$0 sm:$0xff] }
 0x1f1   : > { %972 = vmatmul.mubr.f32.gmra.mrb[32].mxu0 %v812_v43  ;;  %v814_v51 = vmax.f32 %v756_v44, 0.0 }
 0x1f2   : > { %v815_v49 = vmax.f32 %v758_v48, 0.0  ;;  %v761_v50 = vpop.f32.mrb[20].mxu1 }
 0x1f3   : > { %v762_v62 = vadd.f32 %v761_v50, %v2401_v28  ;;  %v763_v63 = vpop.f32.mrb[21].mxu1  ;;  %v1036_v48 = vpop.permute.xlu0 %1035 }
 0x1f4   : > { %v764_v0 = vadd.f32 %v763_v63, %v2403_v29  ;;  %976 = vmatprep.mubr.f32.mxu0 %v815_v49 }
 0x1f5   : > { %977 = vmatmul.mubr.f32.gmra.mrb[34].mxu0 %v814_v51  ;;  %v816_v2 = vmax.f32 %v762_v62, 0.0 }
 0x1f6   : > { %v817_v52 = vmax.f32 %v764_v0, 0.0  ;;  %v767_v1 = vpop.f32.mrb[22].mxu1 }
 0x1f7   : > { %v768_v3 = vadd.f32 %v767_v1, %v2401_v28  ;;  %v769_v4 = vpop.f32.mrb[23].mxu1 }
 0x1f8   : > { %v770_v5 = vadd.f32 %v769_v4, %v2403_v29  ;;  %981 = vmatprep.mubr.f32.mxu0 %v817_v52  ;;  %v1041_v52 = vpop.permute.xlu1 %1040 }
 0x1f9   : > { %982 = vmatmul.mubr.f32.gmra.mrb[36].mxu0 %v816_v2  ;;  %v818_v8 = vmax.f32 %v768_v3, 0.0 }
 0x1fa   : > { %v819_v6 = vmax.f32 %v770_v5, 0.0  ;;  %v773_v7 = vpop.f32.mrb[24].mxu1 }
 0x1fb   : > { %v774_v9 = vadd.f32 %v773_v7, %v2401_v28  ;;  %v775_v10 = vpop.f32.mrb[25].mxu1 }
 0x1fc   : > { %v776_v11 = vadd.f32 %v775_v10, %v2403_v29  ;;  %986 = vmatprep.mubr.f32.mxu0 %v819_v6 }
 0x1fd   : > { %987 = vmatmul.mubr.f32.gmra.mrb[38].mxu0 %v818_v8  ;;  %v820_v14 = vmax.f32 %v774_v9, 0.0 }
 0x1fe   : > { %v821_v12 = vmax.f32 %v776_v11, 0.0  ;;  %v779_v13 = vpop.f32.mrb[26].mxu1 }
 0x1ff   : > { %v780_v15 = vadd.f32 %v779_v13, %v2401_v28  ;;  %v781_v16 = vpop.f32.mrb[27].mxu1  ;;  %v1046_v13 = vpop.permute.xlu1 %1045 }
 0x200   : > { %v782_v17 = vadd.f32 %v781_v16, %v2403_v29  ;;  %991 = vmatprep.mubr.f32.mxu1 %v821_v12 }
 0x201   : > { %992 = vmatmul.mubr.f32.vlgmr.msra.gmra.mrb[32].mxu1 %v820_v14  ;;  %v822_v20 = vmax.f32 %v780_v15, 0.0 }
 0x202   : > { %v823_v18 = vmax.f32 %v782_v17, 0.0  ;;  %v785_v19 = vpop.f32.mrb[28].mxu1 }
 0x203   : > { %v786_v21 = vadd.f32 %v785_v19, %v2401_v28  ;;  %v787_v22 = vpop.f32.mrb[29].mxu1 }
 0x204   : > { %v788_v23 = vadd.f32 %v787_v22, %v2403_v29  ;;  %996 = vmatprep.mubr.f32.mxu1 %v823_v18 }
 0x205   : > { %997 = vmatmul.mubr.f32.gmra.mrb[34].mxu1 %v822_v20  ;;  %v824_v26 = vmax.f32 %v786_v21, 0.0 }
 0x206   : > { %v825_v24 = vmax.f32 %v788_v23, 0.0  ;;  %v791_v25 = vpop.f32.mrb[30].mxu1 }
 0x207   : > { %v792_v27 = vadd.f32 %v791_v25, %v2401_v28  ;;  %v793_v30 = vpop.f32.mrb[31].mxu1 }
 0x208   : > { %v794_v32 = vadd.f32 %v793_v30, %v2403_v29  ;;  %1001 = vmatprep.mubr.f32.mxu1 %v825_v24  ;;  %v1051_v30 = vpop.permute.xlu0 %1050 }
 0x209   : > { %1002 = vmatmul.mubr.f32.gmra.mrb[36].mxu1 %v824_v26  ;;  %v826_v36 = vmax.f32 %v792_v27, 0.0 }
 0x20a   : > { %v827_v33 = vmax.f32 %v794_v32, 0.0 }
 0x20c   : > { %1006 = vmatprep.mubr.f32.mxu1 %v827_v33 }
 0x20d   : > { %1007 = vmatmul.mubr.f32.gmra.mrb[38].mxu1 %v826_v36 }
 0x2a4   : > { %v1644_v37 = vpop.f32.mrb[16].mxu0 }
 0x2a5   : > { %v1645_v38 = vpop.f32.mrb[17].mxu0 }
 0x2a6   : > { %v1646_v43 = vadd.f32 %v1645_v38, %v1644_v37 }
 0x2a8   : > { %v1647_v44 = vpop.f32.mrb[18].mxu0  ;;  %v934_v28 = vadd.f32 %v1646_v43, %v2440_v39 }
 0x2a9   : > { %v1648_v45 = vpop.f32.mrb[19].mxu0 }
 0x2aa   : > { %v1649_v29 = vadd.f32 %v1648_v45, %v1647_v44  ;;  %v1108_v49 = vadd.f32 %v1031_v42, %v934_v28  ;;  %v1056_v42 = vpop.permute.xlu1 %1055 }
 0x2ac   : > { %v1650_v50 = vpop.f32.mrb[20].mxu0  ;;  %v939_v51 = vadd.f32 %v1649_v29, %v2440_v39  ;;  %v1124_v1 = vsel %vm365_vm0, %v1108_v49, -inf }
 0x2ad   : > { %v1651_v62 = vpop.f32.mrb[21].mxu0 }
 0x2ae   : > { %v1109_v63 = vadd.f32 %v1036_v48, %v939_v51  ;;  %v1652_v0 = vadd.f32 %v1651_v62, %v1650_v50 }
 0x2b0   : > { %v1125_v2 = vsel %vm365_vm0, %v1109_v63, -inf  ;;  %v944_v3 = vadd.f32 %v1652_v0, %v2440_v39  ;;  %v1653_v4 = vpop.f32.mrb[22].mxu0 }
 0x2b1   : > { %v1126_v5 = vmax.f32 %v1124_v1, %v1125_v2  ;;  %v1654_v6 = vpop.f32.mrb[23].mxu0 }
 0x2b2   : > { %v1655_v7 = vadd.f32 %v1654_v6, %v1653_v4  ;;  %v2447_v9 = vadd.f32 %v1041_v52, %v944_v3 }
 0x2b3   : > { %v1127_v8 = vrot.slane %v1126_v5, 4 }
 0x2b4   : > { %v949_v10 = vadd.f32 %v1655_v7, %v2440_v39  ;;  %v1656_v11 = vpop.f32.mrb[24].mxu0  ;;  %v1133_v18 = vsel %vm365_vm0, %v2447_v9, -inf }
 0x2b5   : > { %v1128_v12 = vmax.f32 %v1126_v5, %v1127_v8  ;;  %v1657_v14 = vpop.f32.mrb[25].mxu0 }
 0x2b6   : > { %v1111_v15 = vadd.f32 %v1046_v13, %v949_v10  ;;  %v1658_v16 = vadd.f32 %v1657_v14, %v1656_v11 }
 0x2b7   : > { %v1129_v17 = vrot.slane %v1128_v12, 2 }
 0x2b8   : > { %v1134_v19 = vsel %vm365_vm0, %v1111_v15, -inf  ;;  %v954_v20 = vadd.f32 %v1658_v16, %v2440_v39  ;;  %v1659_v21 = vpop.f32.mrb[26].mxu0 }
 0x2b9   : > { %v1130_v22 = vmax.f32 %v1128_v12, %v1129_v17  ;;  %v1135_v23 = vmax.f32 %v1133_v18, %v1134_v19  ;;  %v1660_v24 = vpop.f32.mrb[27].mxu0  ;;  %v1066_v12 = vpop.permute.xlu1 %1065 }
 0x2ba   : > { %v1661_v25 = vadd.f32 %v1660_v24, %v1659_v21  ;;  %v2454_v32 = vadd.f32 %v1051_v30, %v954_v20 }
 0x2bb   : > { %v1131_v26 = vrot.slane %v1130_v22, 1  ;;  %v1136_v27 = vrot.slane %v1135_v23, 4 }
 0x2bc   : > { %v959_v33 = vadd.f32 %v1661_v25, %v2440_v39  ;;  %v1662_v36 = vpop.f32.mrb[28].mxu0  ;;  %v1142_v50 = vsel %vm365_vm0, %v2454_v32, -inf }
 0x2bd   : > { %v1132_v37 = vmax.f32 %v1130_v22, %v1131_v26  ;;  %v1137_v38 = vmax.f32 %v1135_v23, %v1136_v27  ;;  %v1663_v43 = vpop.f32.mrb[29].mxu0 }
 0x2be   : > { %v2457_v44 = vadd.f32 %v1056_v42, %v959_v33  ;;  %v1664_v28 = vadd.f32 %v1663_v43, %v1662_v36 }
 0x2bf   : > { %v1196_v45 = vsub.f32 %v1108_v49, %v1132_v37  ;;  %v1197_v29 = vsub.f32 %v1109_v63, %v1132_v37  ;;  %v1138_v48 = vrot.slane %v1137_v38, 2  ;;  %v1061_v49 = vpop.permute.xlu0 %1060 }
 0x2c0   : > { %v1143_v51 = vsel %vm365_vm0, %v2457_v44, -inf  ;;  %v964_v62 = vadd.f32 %v1664_v28, %v2440_v39  ;;  %v1665_v0 = vpop.f32.mrb[30].mxu0 }
 0x2c1   : > { %v1212_v52 = vmul.f32 1.442695, %v1196_v45  ;;  %v1214_v1 = vmul.f32 1.442695, %v1197_v29  ;;  %v1139_v2 = vmax.f32 %v1137_v38, %v1138_v48  ;;  %v1144_v3 = vmax.f32 %v1142_v50, %v1143_v51  ;;  %v1666_v4 = vpop.f32.mrb[31].mxu0  ;;  %v1076_v29 = vpop.permute.xlu1 %1075 }
 0x2c2   : > { %v1667_v5 = vadd.f32 %v1666_v4, %v1665_v0  ;;  %v2464_v7 = vadd.f32 %v1061_v49, %v964_v62 }
 0x2c3   : > { %1855 = vpow2.f32 %v1212_v52  ;;  %v1140_v6 = vrot.slane %v1139_v2, 1  ;;  %v1145_v63 = vrot.slane %v1144_v3, 4  ;;  %v1071_v30 = vpop.permute.xlu0 %1070 }
 0x2c4   : > { %1857 = vpow2.f32 %v1214_v1  ;;  %v969_v8 = vadd.f32 %v1667_v5, %v2440_v39  ;;  %v1668_v10 = vpop.f32.mrb[32].mxu0  ;;  %v1151_v21 = vsel %vm365_vm0, %v2464_v7, -inf }
 0x2c5   : > { %v1141_v11 = vmax.f32 %v1139_v2, %v1140_v6  ;;  %v1146_v13 = vmax.f32 %v1144_v3, %v1145_v63  ;;  %v1669_v14 = vpop.f32.mrb[33].mxu0 }
 0x2c6   : > { %v2467_v16 = vadd.f32 %v1066_v12, %v969_v8  ;;  %v1670_v17 = vadd.f32 %v1669_v14, %v1668_v10 }
 0x2c7   : > { %v1198_v18 = vsub.f32 %v2447_v9, %v1141_v11  ;;  %v1199_v19 = vsub.f32 %v1111_v15, %v1141_v11  ;;  %v1147_v20 = vrot.slane %v1146_v13, 2 }
 0x2c8   : > { %v1152_v22 = vsel %vm365_vm0, %v2467_v16, -inf  ;;  %v974_v23 = vadd.f32 %v1670_v17, %v2440_v39  ;;  %v1671_v24 = vpop.f32.mrb[34].mxu0 }
 0x2c9   : > { %v1216_v25 = vmul.f32 1.442695, %v1198_v18  ;;  %v1218_v26 = vmul.f32 1.442695, %v1199_v19  ;;  %v1148_v27 = vmax.f32 %v1146_v13, %v1147_v20  ;;  %v1153_v33 = vmax.f32 %v1151_v21, %v1152_v22  ;;  %v1672_v36 = vpop.f32.mrb[35].mxu0 }
 0x2ca   : > { %v2475_v37 = vadd.f32 %v1071_v30, %v974_v23  ;;  %v1673_v9 = vadd.f32 %v1672_v36, %v1671_v24  ;;  %v1081_v23 = vpop.permute.xlu0 %1080 }
 0x2cb   : > { %1859 = vpow2.f32 %v1216_v25  ;;  %v1149_v15 = vrot.slane %v1148_v27, 1  ;;  %v1154_v38 = vrot.slane %v1153_v33, 4 }
 0x2cc   : > { %1861 = vpow2.f32 %v1218_v26  ;;  %v979_v42 = vadd.f32 %v1673_v9, %v2440_v39  ;;  %v1674_v43 = vpop.f32.mrb[36].mxu0  ;;  %v1160_v50 = vsel %vm365_vm0, %v2475_v37, -inf }
 0x2cd   : > { %v1856_v28 = vpop.eup %1855  ;;  %v1150_v45 = vmax.f32 %v1148_v27, %v1149_v15  ;;  %v1155_v48 = vmax.f32 %v1153_v33, %v1154_v38  ;;  %v1675_v51 = vpop.f32.mrb[37].mxu0 }
 0x2ce   : > { %v1858_v62 = vpop.eup %1857  ;;  %v1244_v0 = vsel %vm365_vm0, %v1856_v28, 0.0  ;;  %v1316_v52 = vmul.f32 %v1856_v28, %v2263_v31  ;;  %v2482_v1 = vadd.f32 %v1076_v29, %v979_v42  ;;  %v1676_v2 = vadd.f32 %v1675_v51, %v1674_v43 }
 0x2cf   : > { %v1245_v3 = vsel %vm365_vm0, %v1858_v62, 0.0  ;;  %v1317_v4 = vmul.f32 %v1858_v62, %v2269_v34  ;;  %v1200_v5 = vsub.f32 %v2454_v32, %v1150_v45  ;;  %v1201_v6 = vsub.f32 %v2457_v44, %v1150_v45 }
 0x2d0   : > { %v1246_v49 = vadd.f32 %v1245_v3, %v1244_v0  ;;  %v1332_v63 = vsel %vm365_vm0, %v1316_v52, 0.0  ;;  %v1156_v8 = vrot.slane %v1155_v48, 2  ;;  %v1161_v10 = vsel %vm365_vm0, %v2482_v1, -inf  ;;  %v1677_v11 = vpop.f32.mrb[38].mxu0 }
 0x2d1   : > { %v1333_v31 = vsel %vm365_vm0, %v1317_v4, 0.0  ;;  %v1220_v12 = vmul.f32 1.442695, %v1200_v5  ;;  %v1222_v13 = vmul.f32 1.442695, %v1201_v6  ;;  %v1162_v14 = vmax.f32 %v1160_v50, %v1161_v10  ;;  %v1678_v17 = vpop.f32.mrb[39].mxu0 }
 0x2d2   : > { %v1247_v18 = vrot.slane %v1246_v49, 4  ;;  %v1334_v34 = vadd.f32 %v1333_v31, %v1332_v63  ;;  %v1157_v19 = vmax.f32 %v1155_v48, %v1156_v8  ;;  %v984_v32 = vadd.f32 %v1676_v2, %v2440_v39 }
 0x2d3   : > { %1863 = vpow2.f32 %v1220_v12  ;;  %v1163_v44 = vrot.slane %v1162_v14, 4  ;;  %v1679_v20 = vadd.f32 %v1678_v17, %v1677_v11 }
 0x2d4   : > { %v1248_v21 = vadd.f32 %v1247_v18, %v1246_v49  ;;  %v1335_v22 = vrot.slane %v1334_v34, 4  ;;  %1865 = vpow2.f32 %v1222_v13  ;;  %v1158_v24 = vrot.slane %v1157_v19, 1  ;;  %v1680_v25 = vpop.f32.mrb[32].mxu1  ;;  %v1086_v18 = vpop.permute.xlu1 %1085 }
 0x2d5   : > { %v1860_v26 = vpop.eup %1859  ;;  %v1164_v27 = vmax.f32 %v1162_v14, %v1163_v44  ;;  %v2493_v30 = vadd.f32 %v1081_v23, %v984_v32  ;;  %v989_v33 = vadd.f32 %v1679_v20, %v2440_v39  ;;  %v1681_v36 = vpop.f32.mrb[33].mxu1 }
 0x2d6   : > { %v1862_v9 = vpop.eup %1861  ;;  %v1249_v15 = vrot.slane %v1248_v21, 2  ;;  %v1336_v38 = vadd.f32 %v1335_v22, %v1334_v34  ;;  %v1253_v42 = vsel %vm365_vm0, %v1860_v26, 0.0  ;;  %v1318_v43 = vmul.f32 %v1860_v26, %v2272_v35 }
 0x2d7   : > { %v1254_v28 = vsel %vm365_vm0, %v1862_v9, 0.0  ;;  %v1319_v45 = vmul.f32 %v1862_v9, %v2281_v40  ;;  %v1159_v29 = vmax.f32 %v1157_v19, %v1158_v24  ;;  %v1165_v48 = vrot.slane %v1164_v27, 2 }
 0x2d8   : > { %v1250_v50 = vadd.f32 %v1249_v15, %v1248_v21  ;;  %v1337_v51 = vrot.slane %v1336_v38, 2  ;;  %v1255_v62 = vadd.f32 %v1254_v28, %v1253_v42  ;;  %v1341_v0 = vsel %vm365_vm0, %v1318_v43, 0.0  ;;  %v1683_v52 = vpop.f32.mrb[34].mxu1 }
 0x2d9   : > { %v1342_v2 = vsel %vm365_vm0, %v1319_v45, 0.0  ;;  %v1202_v3 = vsub.f32 %v2464_v7, %v1159_v29  ;;  %v1203_v4 = vsub.f32 %v2467_v16, %v1159_v29  ;;  %v1166_v5 = vmax.f32 %v1164_v27, %v1165_v48  ;;  %v1684_v35 = vpop.f32.mrb[35].mxu1 }
 0x2da   : > { %v1251_v6 = vrot.slane %v1250_v50, 1  ;;  %v1338_v49 = vadd.f32 %v1337_v51, %v1336_v38  ;;  %v1256_v63 = vrot.slane %v1255_v62, 4  ;;  %v1343_v40 = vadd.f32 %v1342_v2, %v1341_v0 }
 0x2db   : > { %v1224_v8 = vmul.f32 1.442695, %v1202_v3  ;;  %v1226_v10 = vmul.f32 1.442695, %v1203_v4  ;;  %v1167_v11 = vrot.slane %v1166_v5, 1  ;;  %v1169_v31 = vsel %vm365_vm0, %v2493_v30, -inf }
 0x2dc   : > { %v1252_v12 = vadd.f32 %v1251_v6, %v1250_v50  ;;  %v1339_v13 = vrot.slane %v1338_v49, 1  ;;  %v1257_v14 = vadd.f32 %v1256_v63, %v1255_v62  ;;  %v1344_v17 = vrot.slane %v1343_v40, 4  ;;  %v1686_v7 = vpop.f32.mrb[36].mxu1  ;;  %v1091_v6 = vpop.permute.xlu0 %1090 }
 0x2dd   : > { %v1864_v34 = vpop.eup %1863  ;;  %1867 = vpow2.f32 %v1224_v8  ;;  %v1168_v16 = vmax.f32 %v1166_v5, %v1167_v11  ;;  %v2506_v19 = vadd.f32 %v1086_v18, %v989_v33  ;;  %v1682_v32 = vadd.f32 %v1681_v36, %v1680_v25  ;;  %v1687_v44 = vpop.f32.mrb[37].mxu1 }
 0x2de   : > { %v1866_v20 = vpop.eup %1865  ;;  %v2508_v21 = vadd.f32 %v1339_v13, %v1338_v49  ;;  %1869 = vrcp.f32 %v1252_v12  ;;  %v1258_v22 = vrot.slane %v1257_v14, 2  ;;  %v1345_v23 = vadd.f32 %v1344_v17, %v1343_v40 }
 0x2df   : > { %v1262_v24 = vsel %vm365_vm0, %v1864_v34, 0.0  ;;  %v1263_v26 = vsel %vm365_vm0, %v1866_v20, 0.0  ;;  %v1320_v27 = vmul.f32 %v1864_v34, %v2284_v41  ;;  %v1321_v9 = vmul.f32 %v1866_v20, %v2293_v46 }
 0x2e0   : > { %v1259_v15 = vadd.f32 %v1258_v22, %v1257_v14  ;;  %v1346_v38 = vrot.slane %v1345_v23, 2  ;;  %v1264_v33 = vadd.f32 %v1263_v26, %v1262_v24  ;;  %1871 = vpow2.f32 %v1226_v10  ;;  %v1689_v25 = vpop.f32.mrb[38].mxu1 }
 0x2e1   : > { %v1350_v36 = vsel %vm365_vm0, %v1320_v27, 0.0  ;;  %v1351_v42 = vsel %vm365_vm0, %v1321_v9, 0.0  ;;  %v1204_v43 = vsub.f32 %v2475_v37, %v1168_v16  ;;  %v1205_v28 = vsub.f32 %v2482_v1, %v1168_v16  ;;  %v1690_v45 = vpop.f32.mrb[39].mxu1  ;;  %v1101_v9 = vpop.permute.xlu0 %1100 }
 0x2e2   : > { %v1260_v29 = vrot.slane %v1259_v15, 1  ;;  %v1347_v48 = vadd.f32 %v1346_v38, %v1345_v23  ;;  %v1265_v50 = vrot.slane %v1264_v33, 4  ;;  %v1352_v41 = vadd.f32 %v1351_v42, %v1350_v36 }
 0x2e3   : > { %v1228_v51 = vmul.f32 1.442695, %v1204_v43  ;;  %v1230_v46 = vmul.f32 1.442695, %v1205_v28  ;;  %v1170_v62 = vsel %vm365_vm0, %v2506_v19, -inf  ;;  %v994_v0 = vadd.f32 %v1682_v32, %v2440_v39 }
 0x2e4   : > { %v1261_v2 = vadd.f32 %v1260_v29, %v1259_v15  ;;  %v1348_v3 = vrot.slane %v1347_v48, 1  ;;  %v1266_v4 = vadd.f32 %v1265_v50, %v1264_v33  ;;  %v1353_v5 = vrot.slane %v1352_v41, 4 }
 0x2e5   : > { %1873 = vpow2.f32 %v1228_v51  ;;  %v1171_v37 = vmax.f32 %v1169_v31, %v1170_v62  ;;  %v2521_v1 = vadd.f32 %v1091_v6, %v994_v0  ;;  %v1685_v49 = vadd.f32 %v1684_v35, %v1683_v52  ;;  %v1096_v52 = vpop.permute.xlu1 %1095 }
 0x2e6   : > { %1875 = vrcp.f32 %v1261_v2  ;;  %v1267_v63 = vrot.slane %v1266_v4, 2  ;;  %v1354_v40 = vadd.f32 %v1353_v5, %v1352_v41  ;;  %v1688_v8 = vadd.f32 %v1687_v44, %v1686_v7 }
 0x2e7   : > { %v1868_v10 = vpop.eup %1867  ;;  %1877 = vpow2.f32 %v1230_v46  ;;  %v1172_v11 = vrot.slane %v1171_v37, 4  ;;  %v1178_v12 = vsel %vm365_vm0, %v2521_v1, -inf  ;;  %v999_v13 = vadd.f32 %v1685_v49, %v2440_v39 }
 0x2e8   : > { %v1870_v14 = vpop.eup %1869  ;;  %v1268_v17 = vadd.f32 %v1267_v63, %v1266_v4  ;;  %v1355_v18 = vrot.slane %v1354_v40, 2  ;;  %v1271_v31 = vsel %vm365_vm0, %v1868_v10, 0.0  ;;  %v1322_v34 = vmul.f32 %v1868_v10, %v2296_v47 }
 0x2e9   : > { %v1173_v35 = vmax.f32 %v1171_v37, %v1172_v11  ;;  %v2528_v16 = vadd.f32 %v1096_v52, %v999_v13  ;;  %v1004_v7 = vadd.f32 %v1688_v8, %v2440_v39  ;;  %v1691_v32 = vadd.f32 %v1690_v45, %v1689_v25 }
 0x2ea   : > { %v1872_v44 = vpop.eup %1871  ;;  %v1269_v20 = vrot.slane %v1268_v17, 1  ;;  %v1359_v22 = vsel %vm365_vm0, %v1322_v34, 0.0  ;;  %v1349_v23 = vadd.f32 %v1348_v3, %v1347_v48  ;;  %v1356_v24 = vadd.f32 %v1355_v18, %v1354_v40 }
 0x2eb   : > { %v1272_v26 = vsel %vm365_vm0, %v1872_v44, 0.0  ;;  %v1323_v27 = vmul.f32 %v1872_v44, %v2305_v53  ;;  %v1174_v15 = vrot.slane %v1173_v35, 2  ;;  %v1179_v47 = vsel %vm365_vm0, %v2528_v16, -inf  ;;  %v1106_v53 = vpop.permute.xlu1 %1105 }
 0x2ec   : > { %v1270_v38 = vadd.f32 %v1269_v20, %v1268_v17  ;;  %v1273_v33 = vadd.f32 %v1272_v26, %v1271_v31  ;;  %v1180_v36 = vmax.f32 %v1178_v12, %v1179_v47  ;;  %v2536_v42 = vadd.f32 %v1101_v9, %v1004_v7 }
 0x2ed   : > { %v1360_v25 = vsel %vm365_vm0, %v1323_v27, 0.0  ;;  %v1175_v43 = vmax.f32 %v1173_v35, %v1174_v15  ;;  %v1009_v28 = vadd.f32 %v1691_v32, %v2440_v39  ;;  %v1357_v45 = vrot.slane %v1356_v24, 1 }
 0x2ee   : > { %1879 = vrcp.f32 %v1270_v38  ;;  %v1274_v29 = vrot.slane %v1273_v33, 4  ;;  %v1361_v48 = vadd.f32 %v1360_v25, %v1359_v22  ;;  %v1181_v50 = vrot.slane %v1180_v36, 4 }
 0x2ef   : > { %v1874_v41 = vpop.eup %1873  ;;  %v1176_v51 = vrot.slane %v1175_v43, 1  ;;  %v1187_v46 = vsel %vm365_vm0, %v2536_v42, -inf  ;;  %v2542_v62 = vadd.f32 %v1106_v53, %v1009_v28  ;;  %v1358_v0 = vadd.f32 %v1357_v45, %v1356_v24 }
 0x2f0   : > { %v1876_v2 = vpop.eup %1875  ;;  %v1275_v3 = vadd.f32 %v1274_v29, %v1273_v33  ;;  %v1362_v4 = vrot.slane %v1361_v48, 4  ;;  %v1280_v39 = vsel %vm365_vm0, %v1874_v41, 0.0  ;;  %v1324_v5 = vmul.f32 %v1874_v41, %v2308_v54 }
 0x2f1   : > { %v1878_v6 = vpop.eup %1877  ;;  %v1177_v37 = vmax.f32 %v1175_v43, %v1176_v51  ;;  %v1182_v49 = vmax.f32 %v1180_v36, %v1181_v50  ;;  %v1188_v63 = vsel %vm365_vm0, %v2542_v62, -inf  ;;  %v1420_v40 = vmul.f32 %v1870_v14, %v2508_v21 }
 0x2f2   : > { %v1276_v8 = vrot.slane %v1275_v3, 2  ;;  %v1363_v10 = vadd.f32 %v1362_v4, %v1361_v48  ;;  %v1281_v11 = vsel %vm365_vm0, %v1878_v6, 0.0  ;;  %v1325_v12 = vmul.f32 %v1878_v6, %v2317_v55 }
 0x2f3   : > { %v1282_v13 = vadd.f32 %v1281_v11, %v1280_v39  ;;  %v1368_v17 = vsel %vm365_vm0, %v1324_v5, 0.0  ;;  %v1206_v54 = vsub.f32 %v2493_v30, %v1177_v37  ;;  %v1207_v18 = vsub.f32 %v2506_v19, %v1177_v37 }
 0x2f4   : > { %v1277_v31 = vadd.f32 %v1276_v8, %v1275_v3  ;;  %v1369_v34 = vsel %vm365_vm0, %v1325_v12, 0.0  ;;  %v1183_v52 = vrot.slane %v1182_v49, 2  ;;  %v1189_v35 = vmax.f32 %v1187_v46, %v1188_v63 }
 0x2f5   : > { %v1283_v7 = vrot.slane %v1282_v13, 4  ;;  %v1370_v21 = vadd.f32 %v1369_v34, %v1368_v17  ;;  %v1232_v14 = vmul.f32 1.442695, %v1206_v54  ;;  %v1234_v32 = vmul.f32 1.442695, %v1207_v18 }
 0x2f6   : > { %v1278_v44 = vrot.slane %v1277_v31, 1  ;;  %v1184_v20 = vmax.f32 %v1182_v49, %v1183_v52  ;;  %v1190_v22 = vrot.slane %v1189_v35, 4  ;;  %v1364_v55 = vrot.slane %v1363_v10, 2 }
 0x2f7   : > { %v1284_v24 = vadd.f32 %v1283_v7, %v1282_v13  ;;  %v1371_v26 = vrot.slane %v1370_v21, 4  ;;  %1881 = vpow2.f32 %v1232_v14  ;;  %v1421_v27 = vmul.f32 %v1876_v2, %v1349_v23 }
 0x2f8   : > { %v1880_v30 = vpop.eup %1879  ;;  %v1279_v9 = vadd.f32 %v1278_v44, %v1277_v31  ;;  %1883 = vpow2.f32 %v1234_v32  ;;  %v1185_v19 = vrot.slane %v1184_v20, 1  ;;  %v1191_v15 = vmax.f32 %v1189_v35, %v1190_v22 }
 0x2f9   : > { %v1285_v47 = vrot.slane %v1284_v24, 2  ;;  %v1372_v38 = vadd.f32 %v1371_v26, %v1370_v21  ;;  %v1422_v33 = vmul.f32 %v1880_v30, %v1358_v0  ;;  %v1437_v43 = vsel %vm1436_vm1, %v1421_v27, %v1420_v40 }
 0x2fa   : > { %1885 = vrcp.f32 %v1279_v9  ;;  %v1186_v36 = vmax.f32 %v1184_v20, %v1185_v19  ;;  %v1192_v25 = vrot.slane %v1191_v15, 2  ;;  %v1365_v45 = vadd.f32 %v1364_v55, %v1363_v10 }
 0x2fb   : > { %v1286_v28 = vadd.f32 %v1285_v47, %v1284_v24  ;;  %v1439_v29 = vsel %vm1438_vm2, %v1422_v33, %v1437_v43  ;;  %v1373_v41 = vrot.slane %v1372_v38, 2 }
 0x2fc   : > { %v1208_v48 = vsub.f32 %v2521_v1, %v1186_v36  ;;  %v1209_v23 = vsub.f32 %v2528_v16, %v1186_v36  ;;  %v1193_v53 = vmax.f32 %v1191_v15, %v1192_v25  ;;  %v1366_v3 = vrot.slane %v1365_v45, 1 }
 0x2fd   : > { %v1287_v50 = vrot.slane %v1286_v28, 1  ;;  %v1374_v5 = vadd.f32 %v1373_v41, %v1372_v38 }
 0x2fe   : > { %v1236_v51 = vmul.f32 1.442695, %v1208_v48  ;;  %v1238_v46 = vmul.f32 1.442695, %v1209_v23  ;;  %v1194_v2 = vrot.slane %v1193_v53, 1  ;;  %v1367_v8 = vadd.f32 %v1366_v3, %v1365_v45 }
 0x2ff   : > { %v1288_v0 = vadd.f32 %v1287_v50, %v1286_v28 }
 0x300   : > { %1887 = vpow2.f32 %v1236_v51  ;;  %v1195_v4 = vmax.f32 %v1193_v53, %v1194_v2 }
 0x301   : > { %v1882_v39 = vpop.eup %1881  ;;  %1889 = vrcp.f32 %v1288_v0 }
 0x302   : > { %v1884_v6 = vpop.eup %1883  ;;  %v1289_v37 = vsel %vm365_vm0, %v1882_v39, 0.0  ;;  %v1326_v1 = vmul.f32 %v1882_v39, %v2320_v56  ;;  %1891 = vpow2.f32 %v1238_v46  ;;  %v1210_v16 = vsub.f32 %v2536_v42, %v1195_v4 }
 0x303   : > { %v1290_v49 = vsel %vm365_vm0, %v1884_v6, 0.0  ;;  %v1327_v63 = vmul.f32 %v1884_v6, %v2329_v57  ;;  %v1211_v40 = vsub.f32 %v2542_v62, %v1195_v4  ;;  %v1375_v42 = vrot.slane %v1374_v5, 1 }
 0x304   : > { %v1886_v10 = vpop.eup %1885  ;;  %v1291_v11 = vadd.f32 %v1290_v49, %v1289_v37  ;;  %v1377_v12 = vsel %vm365_vm0, %v1326_v1, 0.0  ;;  %v1240_v13 = vmul.f32 1.442695, %v1210_v16 }
 0x305   : > { %v1378_v17 = vsel %vm365_vm0, %v1327_v63, 0.0  ;;  %v1242_v54 = vmul.f32 1.442695, %v1211_v40  ;;  %v1423_v56 = vmul.f32 %v1886_v10, %v1367_v8  ;;  %v1376_v7 = vadd.f32 %v1375_v42, %v1374_v5 }
 0x306   : > { %v1292_v18 = vrot.slane %v1291_v11, 4  ;;  %v1379_v31 = vadd.f32 %v1378_v17, %v1377_v12  ;;  %1893 = vpow2.f32 %v1240_v13 }
 0x307   : > { %1895 = vpow2.f32 %v1242_v54  ;;  %v1441_v34 = vsel %vm1440_vm3, %v1423_v56, %v1439_v29 }
 0x308   : > { %v1293_v57 = vadd.f32 %v1292_v18, %v1291_v11  ;;  %v1380_v52 = vrot.slane %v1379_v31, 4 }
 0x30a   : > { %v1888_v62 = vpop.eup %1887  ;;  %v1294_v35 = vrot.slane %v1293_v57, 2  ;;  %v1381_v22 = vadd.f32 %v1380_v52, %v1379_v31 }
 0x30b   : > { %v1890_v21 = vpop.eup %1889  ;;  %v1298_v14 = vsel %vm365_vm0, %v1888_v62, 0.0  ;;  %v1328_v32 = vmul.f32 %v1888_v62, %v2332_v58 }
 0x30c   : > { %v1892_v44 = vpop.eup %1891  ;;  %v1295_v20 = vadd.f32 %v1294_v35, %v1293_v57  ;;  %v1424_v55 = vmul.f32 %v1890_v21, %v1376_v7  ;;  %v1382_v58 = vrot.slane %v1381_v22, 2 }
 0x30d   : > { %v1299_v24 = vsel %vm365_vm0, %v1892_v44, 0.0  ;;  %v1329_v26 = vmul.f32 %v1892_v44, %v2341_v59  ;;  %v1386_v27 = vsel %vm365_vm0, %v1328_v32, 0.0 }
 0x30e   : > { %v1296_v30 = vrot.slane %v1295_v20, 1  ;;  %v1300_v9 = vadd.f32 %v1299_v24, %v1298_v14  ;;  %v1443_v19 = vsel %vm1442_vm4, %v1424_v55, %v1441_v34  ;;  %v1383_v41 = vadd.f32 %v1382_v58, %v1381_v22 }
 0x30f   : > { %v1387_v15 = vsel %vm365_vm0, %v1329_v26, 0.0 }
 0x310   : > { %v1894_v47 = vpop.eup %1893  ;;  %v1297_v38 = vadd.f32 %v1296_v30, %v1295_v20  ;;  %v1301_v33 = vrot.slane %v1300_v9, 4  ;;  %v1388_v36 = vadd.f32 %v1387_v15, %v1386_v27  ;;  %v1384_v5 = vrot.slane %v1383_v41, 1 }
 0x311   : > { %v1896_v25 = vpop.eup %1895  ;;  %v1307_v43 = vsel %vm365_vm0, %v1894_v47, 0.0  ;;  %v1330_v28 = vmul.f32 %v1894_v47, %v2344_v60 }
 0x312   : > { %v1302_v45 = vadd.f32 %v1301_v33, %v1300_v9  ;;  %v1308_v59 = vsel %vm365_vm0, %v1896_v25, 0.0  ;;  %v1331_v29 = vmul.f32 %v1896_v25, %v2353_v61  ;;  %v1389_v23 = vrot.slane %v1388_v36, 4 }
 0x313   : > { %v1309_v48 = vadd.f32 %v1308_v59, %v1307_v43  ;;  %v1395_v53 = vsel %vm365_vm0, %v1330_v28, 0.0  ;;  %1897 = vrcp.f32 %v1297_v38  ;;  %v1385_v49 = vadd.f32 %v1384_v5, %v1383_v41 }
 0x314   : > { %v1303_v50 = vrot.slane %v1302_v45, 2  ;;  %v1396_v51 = vsel %vm365_vm0, %v1331_v29, 0.0  ;;  %v1390_v2 = vadd.f32 %v1389_v23, %v1388_v36 }
 0x315   : > { %v1310_v46 = vrot.slane %v1309_v48, 4  ;;  %v1397_v0 = vadd.f32 %v1396_v51, %v1395_v53 }
 0x316   : > { %v1304_v3 = vadd.f32 %v1303_v50, %v1302_v45  ;;  %v1391_v61 = vrot.slane %v1390_v2, 2 }
 0x317   : > { %v1311_v4 = vadd.f32 %v1310_v46, %v1309_v48  ;;  %v1398_v60 = vrot.slane %v1397_v0, 4 }
 0x318   : > { %v1305_v39 = vrot.slane %v1304_v3, 1  ;;  %v1392_v8 = vadd.f32 %v1391_v61, %v1390_v2 }
 0x319   : > { %v1312_v6 = vrot.slane %v1311_v4, 2  ;;  %v1399_v1 = vadd.f32 %v1398_v60, %v1397_v0 }
 0x31a   : > { %v1306_v37 = vadd.f32 %v1305_v39, %v1304_v3  ;;  %v1393_v17 = vrot.slane %v1392_v8, 1 }
 0x31b   : > { %v1313_v16 = vadd.f32 %v1312_v6, %v1311_v4  ;;  %v1400_v10 = vrot.slane %v1399_v1, 2 }
 0x31c   : > { %1899 = vrcp.f32 %v1306_v37  ;;  %v1394_v56 = vadd.f32 %v1393_v17, %v1392_v8 }
 0x31d   : > { %v1898_v63 = vpop.eup %1897  ;;  %v1314_v40 = vrot.slane %v1313_v16, 1  ;;  %v1401_v54 = vadd.f32 %v1400_v10, %v1399_v1 }
 0x31e   : > { %v1425_v11 = vmul.f32 %v1898_v63, %v1385_v49 }
 0x31f   : > { %v1315_v12 = vadd.f32 %v1314_v40, %v1313_v16  ;;  %v1402_v31 = vrot.slane %v1401_v54, 1 }
 0x320   : > { %v1445_v13 = vsel %vm1444_vm5, %v1425_v11, %v1443_v19 }
 0x321   : > { %1901 = vrcp.f32 %v1315_v12  ;;  %v1403_v57 = vadd.f32 %v1402_v31, %v1401_v54 }
 0x326   : > { %v1900_v18 = vpop.eup %1899 }
 0x327   : > { %v1426_v42 = vmul.f32 %v1900_v18, %v1394_v56 }
 0x329   : > { %v1447_v34 = vsel %vm1446_vm6, %v1426_v42, %v1445_v13 }
 0x32b   : > { %v1902_v52 = vpop.eup %1901 }
 0x32c   : > { %v1427_v62 = vmul.f32 %v1902_v52, %v1403_v57 }
 0x32e   : > { %v1449_v35 = vsel %vm1448_vm7, %v1427_v62, %v1447_v34 }
 0x32f   : > { %1451 = vst.msk [vmem:[%s319_s20] sm:$0xff] %vm365_vm0, %v1449_v35 }
 0x330   : > { %1916 = shalt.err (!%p1913_p3)
}
 0x331   : > { %s1917_s12 = scalar_lea.hbm %s2584_s25, 128  ;;  %s1921_s18 = scalar_lea.hbm %s2635_s8, 256 }
 0x332   : > { %p1918_p4 = scmp.ne.s32.totalorder %s2584_s25, %s1917_s12  ;;  %p1922_p9 = scmp.lt.u32.totalorder %s2584_s25, %s2635_s8 }
 0x333   : > { %p1923_p10 = scmp.lt.u32.totalorder %s1921_s18, %s1917_s12  ;;  %p1925_p12 = scmp.lt.u32.totalorder %s1917_s12, %s2584_s25 }
 0x334   : > { %p1919_p7 = pnand %p1918_p4, %p2053_p5 }
 0x335   : > { %p1924_p11 = por %p1923_p10, %p1922_p9 }
 0x336   : > { %p1920_p8 = pneg %p1919_p7 }
 0x337   : > { %p1926_p13 = por %p1925_p12, %p1924_p11 }
 0x339   : > { %p1927_p0 = pnand %p1926_p13, %p1920_p8 }
 0x33b   : > { %1930 = shalt.err (!%p1927_p0)
}
 0x33c   : > { %1812 = dma.vmem_to_hbm [thread:$0]  (%p2053_p5), %s2586_s22, 128, %s2584_s25, %s1453_s26  }
 0x33d PF: > { %p1818_p1 = scmp.ge.s32.totalorder %s1965_s30, 2  ;;  %s1478_s21 = sand.u32 1, %s1953_s27  }
 0x33e   : > { %s1479_s9 = scalar_lea.sflag [#allocation3], %s1478_s21 }
 0x33f   : > { %p1815_p2 = pnand %p1818_p1, %p2057_p6 }
 0x341   : > { %1948 = dma.done.wait (!%p1815_p2), %s1479_s9, 128  }
 0x342   : > { %1950 = vsyncadd (!%p1815_p2), %s1479_s9, 4294967168  ;;  %p18_p3 = scmp.ge.s32.totalorder %s2040_s11, 4   ;;  %s2638_s27 = smov %s1957_s28 }
 0x343   : > { %s2639_s28 = smov %s1961_s29  ;;  %s2640_s29 = smov %s2051_s14 }
 0x344   : > { %s2641_s30 = smov %s2040_s11  ;;  %20 = sbr.rel (!%p18_p3) target bundleno = 3 (0x3), region = 90 }
 0x34b   :  { %1484 = vsyncpa [#allocation3], 1 }
 0x34c   :  { %1486 = vsyncpa [#allocation3 + $0x1], 1 }

</bundles_post_ra>
